<compile_context>
chip_gen: v6e
topology: v6e:2x2x1
jax: 0.10.0
libtpu: 0.0.40
codegen_flags: <defaults>
</compile_context>

<pallas_src>
import math
import jax
import jax.numpy as jnp
from jax.experimental import pallas as pl
from jax.experimental.pallas import tpu as pltpu

_EPS = 1e-5   # TODO(synk): LayerNorm class not provided; assumed VITS channel LN, eps=1e-5.
_LANE = 128


def _round_up(n, k):
    return ((n + k - 1) // k) * k


# ----------------------------- Pallas kernel (grid = (batch, layer)) ----------------------------

def _make_kernel(T, D, Dp, H, DHp, KS):
    def kernel(x_ref, m_ref,
               wqkv_ref, bqkv_ref, wo_ref, bo_ref, relk_ref, wrv_ref,
               g1_ref, be1_ref, w1_ref, b1_ref, w2_ref, b2_ref, g2_ref, be2_ref,
               out_ref, act_ref):
        layer = pl.program_id(1)

        # Load the (padded) input at the first layer; afterwards the activation lives
        # in VMEM scratch across the "layer" grid axis (no per-layer HBM round trip).
        @pl.when(layer == 0)
        def _():
            act_ref[...] = x_ref[...]

        x = act_ref[...]                       # (T, Dp) f32
        m = m_ref[...]                         # (T, 1)  f32
        kill = (m * m.T) == 0.0                # (T, T): masked_fill positions (hoisted)

        # channel mask (< D) so LayerNorm stats ignore padded lanes
        ch = jax.lax.broadcasted_iota(jnp.int32, (1, Dp), 1)
        ch_mask = (ch < D).astype(jnp.float32)
        inv_d = 1.0 / D

        def layer_norm(y, g, b):
            mu = jnp.sum(y, axis=-1, keepdims=True) * inv_d
            cen = (y - mu) * ch_mask
            var = jnp.sum(cen * cen, axis=-1, keepdims=True) * inv_d
            return cen * jax.lax.rsqrt(var + _EPS) * g + b

        # ---- encoder layer: x = x * x_mask, keep residual ----
        xm = x * m
        x_res = xm

        # ---- RelPosMultiHeadAttention: fused QKV projection (1/sqrt(DH) pre-folded in Q) ----
        qkv = jnp.dot(xm, wqkv_ref[...], preferred_element_type=jnp.float32) + bqkv_ref[...]
        HD = H * DHp
        q = qkv[:, 0:HD]
        k = qkv[:, HD:2 * HD]
        v = qkv[:, 2 * HD:3 * HD]

        head_outs = []
        for h in range(H):                     # H is small & static; slices are 128-aligned
            lo, hi = h * DHp, (h + 1) * DHp
            qh = q[:, lo:hi]
            kh = k[:, lo:hi]
            vh = v[:, lo:hi]

            # scores: qh . kh^T  (NT dot_general, no transpose materialised)
            s = jax.lax.dot_general(qh, kh, (((1,), (1,)), ((), ())),
                                    preferred_element_type=jnp.float32)
            # relative-key logits; reference's (buggy) relative_to_absolute keeps only the
            # first T columns, so rel_k was pre-sliced + pre-transposed to (DHp, T).
            s = s + jnp.dot(qh, relk_ref[h], preferred_element_type=jnp.float32)
            # masked_fill(attn_mask == 0, -1e4)
            s = jnp.where(kill, -10000.0, s)

            # softmax over last dim
            s = s - jnp.max(s, axis=-1, keepdims=True)
            e = jnp.exp(s)
            attn = e * pl.reciprocal(jnp.sum(e, axis=-1, keepdims=True), approx=True)

            oh = jnp.dot(attn, vh, preferred_element_type=jnp.float32)      # (T, DHp)
            # reference's (buggy) rel-value term:
            #   contrib[i, j] = sum_c attn[i, c] * rel_v[h, j, c + T - 1 - i]
            # The row-dependent skew is pre-baked into wrv host-side, so this is a
            # loop-free broadcast-multiply + sublane reduction.
            oh = oh + jnp.sum(attn[:, :, None] * wrv_ref[h], axis=1)
            head_outs.append(oh)

        o = jnp.concatenate(head_outs, axis=1)                              # (T, H*DHp)
        o = jnp.dot(o, wo_ref[...], preferred_element_type=jnp.float32) + bo_ref[...]

        # residual + LayerNorm1 (dropout_p = 0 -> identity)
        x1 = layer_norm(x_res + o, g1_ref[...], be1_ref[...])
        y_res = x1

        # ---- FeedForwardNetwork: two "same"-padded convs as single unfolded matmuls ----
        pad_l = (KS - 1) // 2
        pad_r = KS // 2

        def conv_same(y, wu_ref_, b_ref_):
            parts = []
            if pad_l > 0:
                parts.append(jnp.zeros((pad_l, y.shape[1]), jnp.float32))
            parts.append(y)
            if pad_r > 0:
                parts.append(jnp.zeros((pad_r, y.shape[1]), jnp.float32))
            yp = jnp.concatenate(parts, axis=0) if len(parts) > 1 else y
            taps = [yp[kk:kk + T, :] for kk in range(KS)]
            u = jnp.concatenate(taps, axis=1) if KS > 1 else taps[0]        # (T, KS*width)
            return jnp.dot(u, wu_ref_[...], preferred_element_type=jnp.float32) + b_ref_[...]

        hid = jnp.maximum(conv_same(x1 * m, w1_ref, b1_ref), 0.0)
        ffn = conv_same(hid * m, w2_ref, b2_ref) * m

        x2 = layer_norm(y_res + ffn, g2_ref[...], be2_ref[...])

        act_ref[...] = x2
        out_ref[...] = x2

    return kernel


def _run_encoder(x_pad, m, packed, *, T, D, Dp, H, DHp, KS, L):
    B = x_pad.shape[0]
    kernel = _make_kernel(T, D, Dp, H, DHp, KS)

    def weight_spec(arr):
        rank = arr.ndim
        blk = (None,) + arr.shape[1:]
        return pl.BlockSpec(blk, lambda b, l, _r=rank: (l,) + (0,) * (_r - 1))

    in_specs = [
        pl.BlockSpec((None, T, Dp), lambda b, l: (b, 0, 0)),
        pl.BlockSpec((None, T, 1), lambda b, l: (b, 0, 0)),
    ] + [weight_spec(w) for w in packed]

    return pl.pallas_call(
        kernel,
        out_shape=jax.ShapeDtypeStruct((B, T, Dp), jnp.float32),
        grid=(B, L),
        in_specs=in_specs,
        out_specs=pl.BlockSpec((None, T, Dp), lambda b, l: (b, 0, 0)),
        scratch_shapes=[pltpu.VMEM((T, Dp), jnp.float32)],
        compiler_params=pltpu.CompilerParams(
            dimension_semantics=("parallel", "arbitrary")),
    )(x_pad, m, *packed)


# ----------------------------- host-side packing -----------------------------

def get_relative_emb(emb, t, window):
    """emb: (H, 2*window+1, DH) -> (H, 2t-1, DH), same as the reference (static slicing)."""
    pad_length = max(t - window, 0)
    start = max(window + 1 - t, 0)
    end = start + 2 * t - 1
    if pad_length > 0:
        emb = jnp.pad(emb, ((0, 0), (pad_length, pad_length), (0, 0)))
    return emb[:, start:end, :]


def _pack_layer(p, *, T, window, D, Dp, H, DH, DHp, KS, HFFN, HFFNp):
    scale = DH ** -0.5

    def pack_head_cols(w, b, s):
        w3 = jnp.pad((w * s).reshape(D, H, DH), ((0, Dp - D), (0, 0), (0, DHp - DH)))
        b3 = jnp.pad((b * s).reshape(1, H, DH), ((0, 0), (0, 0), (0, DHp - DH)))
        return w3.reshape(Dp, H * DHp), b3.reshape(1, H * DHp)

    wq, bq = pack_head_cols(p["wq"], p["bq"], scale)   # 1/sqrt(DH) folded into Q
    wk, bk = pack_head_cols(p["wk"], p["bk"], 1.0)
    wv, bv = pack_head_cols(p["wv"], p["bv"], 1.0)
    wqkv = jnp.concatenate([wq, wk, wv], axis=1)       # (Dp, 3*H*DHp)
    bqkv = jnp.concatenate([bq, bk, bv], axis=1)       # (1, 3*H*DHp)

    wo = jnp.pad(p["wo"].reshape(H, DH, D),
                 ((0, 0), (0, DHp - DH), (0, Dp - D))).reshape(H * DHp, Dp)
    bo = jnp.pad(p["bo"], ((0, 0), (0, Dp - D)))

    # rel-key: only the first T "positions" are used (relative_to_absolute bug);
    # pre-transpose so the kernel does a plain (T, DHp) @ (DHp, T) matmul.
    ek = get_relative_emb(p["emb_rel_k"], T, window)                       # (H, 2T-1, DH)
    relk = jnp.pad(jnp.transpose(ek[:, :T, :], (0, 2, 1)),
                   ((0, 0), (0, DHp - DH), (0, 0)))                        # (H, DHp, T)

    # rel-value (buggy transposed contraction, requires DH == 2T-1): pre-bake the
    # per-output-row skew:  wrv[h, i, c, j] = rel_v[h, j, c + T - 1 - i]
    ev = get_relative_emb(p["emb_rel_v"], T, window)                       # (H, 2T-1, DH)
    idx = jnp.arange(T)[None, :] + (T - 1) - jnp.arange(T)[:, None]        # [i, c] -> c+T-1-i
    wrv = jnp.transpose(ev[:, :, idx], (0, 2, 3, 1))                       # (H, T, T, 2T-1)
    wrv = jnp.pad(wrv, ((0, 0), (0, 0), (0, 0), (0, DHp - (2 * T - 1))))   # (H, T, T, DHp)

    g1 = jnp.pad(p["g1"], ((0, 0), (0, Dp - D)))
    be1 = jnp.pad(p["be1"], ((0, 0), (0, Dp - D)))
    g2 = jnp.pad(p["g2"], ((0, 0), (0, Dp - D)))
    be2 = jnp.pad(p["be2"], ((0, 0), (0, Dp - D)))

    # FFN k-tap convs unfolded: (T, KS*width) @ (KS*width, out)
    w1u = jnp.pad(p["w1"], ((0, 0), (0, Dp - D), (0, HFFNp - HFFN))).reshape(KS * Dp, HFFNp)
    b1 = jnp.pad(p["b1"], ((0, 0), (0, HFFNp - HFFN)))
    w2u = jnp.pad(p["w2"], ((0, 0), (0, HFFNp - HFFN), (0, Dp - D))).reshape(KS * HFFNp, Dp)
    b2 = jnp.pad(p["b2"], ((0, 0), (0, Dp - D)))

    return (wqkv, bqkv, wo, bo, relk, wrv, g1, be1, w1u, b1, w2u, b2, g2, be2)


def rel_pos_transformer_encoder(x_bdt, x_mask_b1t, layer_params, window):
    """x: (B, D, T), x_mask: (B, 1, T) -> (B, D, T)  (PyTorch NCL layout at the boundary)."""
    B, D, T = x_bdt.shape
    L = len(layer_params)
    H, _, DH = layer_params[0]["emb_rel_k"].shape
    KS, _, HFFN = layer_params[0]["w1"].shape
    assert DH == 2 * T - 1, "reference's matmul_with_rel_values requires head_channels == 2T-1"
    assert D == H * DH
    assert T % 8 == 0, "T must be a multiple of 8 (sublane tiling)"
    # NOTE: all layers must share shapes (true here) so their weights can be stacked.

    Dp = _round_up(D, _LANE)
    DHp = _round_up(DH, _LANE)
    HFFNp = _round_up(HFFN, _LANE)

    x = jnp.transpose(x_bdt, (0, 2, 1))                                    # (B, T, D)
    x = jnp.pad(x, ((0, 0), (0, 0), (0, Dp - D)))                          # lane-dense channels
    m = jnp.transpose(x_mask_b1t, (0, 2, 1)).astype(jnp.float32)           # (B, T, 1)

    per_layer = [_pack_layer(p, T=T, window=window, D=D, Dp=Dp, H=H, DH=DH,
                             DHp=DHp, KS=KS, HFFN=HFFN, HFFNp=HFFNp)
                 for p in layer_params]
    packed = tuple(jnp.stack([args[i] for args in per_layer], axis=0)
                   for i in range(len(per_layer[0])))

    out = _run_encoder(x, m, packed, T=T, D=D, Dp=Dp, H=H, DHp=DHp, KS=KS, L=L)
    out = out * m                                                          # final x * x_mask
    return jnp.transpose(out[:, :, :D], (0, 2, 1))                         # back to (B, D, T)


# ----------------------------- parameter init (random demo weights) -----------------------------

def init_layer_params(key, D, H, DH, HFFN, KS, W):
    ks = jax.random.split(key, 14)
    rel_std = DH ** -0.5

    def nrm(k, shape, scale):
        return jax.random.normal(k, shape, jnp.float32) * scale

    return dict(
        wq=nrm(ks[0], (D, D), 1.0 / math.sqrt(D)),  bq=nrm(ks[1], (1, D), 0.02),
        wk=nrm(ks[2], (D, D), 1.0 / math.sqrt(D)),  bk=nrm(ks[3], (1, D), 0.02),
        wv=nrm(ks[4], (D, D), 1.0 / math.sqrt(D)),  bv=nrm(ks[5], (1, D), 0.02),
        wo=nrm(ks[6], (D, D), 1.0 / math.sqrt(D)),  bo=nrm(ks[7], (1, D), 0.02),
        emb_rel_k=nrm(ks[8], (H, 2 * W + 1, DH), rel_std),
        emb_rel_v=nrm(ks[9], (H, 2 * W + 1, DH), rel_std),
        g1=jnp.ones((1, D), jnp.float32), be1=jnp.zeros((1, D), jnp.float32),
        w1=nrm(ks[10], (KS, D, HFFN), 1.0 / math.sqrt(D * KS)),
        b1=nrm(ks[11], (1, HFFN), 0.02),
        w2=nrm(ks[12], (KS, HFFN, D), 1.0 / math.sqrt(HFFN * KS)),
        b2=nrm(ks[13], (1, D), 0.02),
        g2=jnp.ones((1, D), jnp.float32), be2=jnp.zeros((1, D), jnp.float32),
    )


# ----------------------------- main -----------------------------

if __name__ == "__main__":
    key = jax.random.PRNGKey(0)

    B, T = 2, 8
    H = 2
    DH = 2 * T - 1        # 15: head_channels == 2T-1, required by the reference's
                          # (transposed) matmul_with_rel_values to be shape-consistent
    D = H * DH            # in_channels = hidden_channels = out_channels = 30
    HFFN = 48             # hidden_channels_ffn
    KS = 3                # kernel_size (FFN conv)
    W = 4                 # rel_attn_window_size
    L = 2                 # num_layers

    k_x, k_p = jax.random.split(key)
    x = jax.random.normal(k_x, (B, D, T), jnp.float32)        # PyTorch (b, d, t)
    lengths = jnp.array([T, T - 2])
    x_mask = (jnp.arange(T)[None, :] < lengths[:, None]).astype(jnp.float32)[:, None, :]  # (b,1,t)

    layer_keys = jax.random.split(k_p, L)
    params = [init_layer_params(layer_keys[i], D, H, DH, HFFN, KS, W) for i in range(L)]

    out = rel_pos_transformer_encoder(x, x_mask, params, W)
    jax.block_until_ready(out)
    assert out.shape == (B, D, T)
    print("KERNEL_OK")
</pallas_src>

<mosaic_0001>
module attributes {stable_mosaic.version = 11 : i64} {
  func.func @kernel(%arg0: i32, %arg1: i32, %arg2: memref<1x8x128xf32, #tpu.memory_space<vmem>>, %arg3: memref<1x8x1xf32, #tpu.memory_space<vmem>>, %arg4: memref<1x128x768xf32, #tpu.memory_space<vmem>>, %arg5: memref<1x1x768xf32, #tpu.memory_space<vmem>>, %arg6: memref<1x256x128xf32, #tpu.memory_space<vmem>>, %arg7: memref<1x1x128xf32, #tpu.memory_space<vmem>>, %arg8: memref<1x2x128x8xf32, #tpu.memory_space<vmem>>, %arg9: memref<1x2x8x8x128xf32, #tpu.memory_space<vmem>>, %arg10: memref<1x1x128xf32, #tpu.memory_space<vmem>>, %arg11: memref<1x1x128xf32, #tpu.memory_space<vmem>>, %arg12: memref<1x384x128xf32, #tpu.memory_space<vmem>>, %arg13: memref<1x1x128xf32, #tpu.memory_space<vmem>>, %arg14: memref<1x384x128xf32, #tpu.memory_space<vmem>>, %arg15: memref<1x1x128xf32, #tpu.memory_space<vmem>>, %arg16: memref<1x1x128xf32, #tpu.memory_space<vmem>>, %arg17: memref<1x1x128xf32, #tpu.memory_space<vmem>>, %arg18: memref<1x8x128xf32, #tpu.memory_space<vmem>>, %arg19: memref<8x128xf32, #tpu.memory_space<vmem>>) attributes {dimension_semantics = [#tpu.dimension_semantics<parallel>, #tpu.dimension_semantics<arbitrary>], iteration_bounds = array<i64: 2, 2>, scalar_prefetch = 0 : i64, scratch_operands = 1 : i64, tpu.core_type = #tpu.core_type<tc>, window_params = [{transform_indices = @transform_0, window_bounds = array<i64: 1, 8, 128>}, {transform_indices = @transform_1, window_bounds = array<i64: 1, 8, 1>}, {transform_indices = @transform_2, window_bounds = array<i64: 1, 128, 768>}, {transform_indices = @transform_3, window_bounds = array<i64: 1, 1, 768>}, {transform_indices = @transform_4, window_bounds = array<i64: 1, 256, 128>}, {transform_indices = @transform_5, window_bounds = array<i64: 1, 1, 128>}, {transform_indices = @transform_6, window_bounds = array<i64: 1, 2, 128, 8>}, {transform_indices = @transform_7, window_bounds = array<i64: 1, 2, 8, 8, 128>}, {transform_indices = @transform_8, window_bounds = array<i64: 1, 1, 128>}, {transform_indices = @transform_9, window_bounds = array<i64: 1, 1, 128>}, {transform_indices = @transform_10, window_bounds = array<i64: 1, 384, 128>}, {transform_indices = @transform_11, window_bounds = array<i64: 1, 1, 128>}, {transform_indices = @transform_12, window_bounds = array<i64: 1, 384, 128>}, {transform_indices = @transform_13, window_bounds = array<i64: 1, 1, 128>}, {transform_indices = @transform_14, window_bounds = array<i64: 1, 1, 128>}, {transform_indices = @transform_15, window_bounds = array<i64: 1, 1, 128>}, {transform_indices = @transform_16, window_bounds = array<i64: 1, 8, 128>}]} {
    %c0_i32 = arith.constant 0 : i32
    %0 = arith.cmpi eq, %arg1, %c0_i32 : i32
    %1 = arith.extui %0 : i1 to i32
    %c0_i32_0 = arith.constant 0 : i32
    %2 = arith.cmpi ne, %1, %c0_i32_0 : i32
    scf.if %2 {
      %c0_96 = arith.constant 0 : index
      %c0_97 = arith.constant 0 : index
      %c0_98 = arith.constant 0 : index
      %187 = vector.load %arg2[%c0_96, %c0_97, %c0_98] : memref<1x8x128xf32, #tpu.memory_space<vmem>>, vector<1x8x128xf32>
      %188 = vector.shape_cast %187 : vector<1x8x128xf32> to vector<8x128xf32>
      %c0_99 = arith.constant 0 : index
      %c0_100 = arith.constant 0 : index
      %189 = vector.load %arg19[%c0_99, %c0_100] : memref<8x128xf32, #tpu.memory_space<vmem>>, vector<8x128xf32>
      tpu.vector_store %arg19[%c0_99, %c0_100], %188 {strides = array<i32>} : memref<8x128xf32, #tpu.memory_space<vmem>>, vector<8x128xf32>,
    } else {
    }
    %c0 = arith.constant 0 : index
    %c0_1 = arith.constant 0 : index
    %3 = vector.load %arg19[%c0, %c0_1] : memref<8x128xf32, #tpu.memory_space<vmem>>, vector<8x128xf32>
    %c0_2 = arith.constant 0 : index
    %c0_3 = arith.constant 0 : index
    %c0_4 = arith.constant 0 : index
    %4 = vector.load %arg3[%c0_2, %c0_3, %c0_4] : memref<1x8x1xf32, #tpu.memory_space<vmem>>, vector<1x8x1xf32>
    %5 = vector.shape_cast %4 : vector<1x8x1xf32> to vector<8x1xf32>
    %6 = tpu.transpose %5, [1, 0] : vector<8x1xf32> -> vector<1x8xf32>
    %7 = vector.broadcast %5 : vector<8x1xf32> to vector<8x8xf32>
    %8 = vector.broadcast %6 : vector<1x8xf32> to vector<8x8xf32>
    %9 = arith.mulf %7, %8 : vector<8x8xf32>
    %cst = arith.constant 0.000000e+00 : f32
    %10 = vector.broadcast %cst : f32 to vector<8x8xf32>
    %11 = arith.cmpf oeq, %9, %10 : vector<8x8xf32>
    %12 = tpu.iota {dimensions = array<i32: 1>} : vector<1x128xi32>
    %c30_i32 = arith.constant 30 : i32
    %13 = vector.broadcast %c30_i32 : i32 to vector<1x128xi32>
    %14 = arith.cmpi slt, %12, %13 : vector<1x128xi32>
    %15 = arith.extui %14 : vector<1x128xi1> to vector<1x128xi32>
    %16 = arith.sitofp %15 : vector<1x128xi32> to vector<1x128xf32>
    %17 = vector.broadcast %5 : vector<8x1xf32> to vector<8x128xf32>
    %18 = arith.mulf %3, %17 : vector<8x128xf32>
    %c0_5 = arith.constant 0 : index
    %c0_6 = arith.constant 0 : index
    %c0_7 = arith.constant 0 : index
    %19 = vector.load %arg4[%c0_5, %c0_6, %c0_7] : memref<1x128x768xf32, #tpu.memory_space<vmem>>, vector<1x128x768xf32>
    %20 = vector.shape_cast %19 : vector<1x128x768xf32> to vector<128x768xf32>
    %cst_8 = arith.constant dense<0.000000e+00> : vector<8x768xf32>
    %21 = tpu.matmul %18, %20, %cst_8 {dimension_numbers = #tpu.dot_dimension_numbers<[1], [0], [0], [1], [0, 0, 1, 1], [], []>} : vector<8x128xf32>, vector<128x768xf32>, vector<8x768xf32> -> vector<8x768xf32>
    %c0_9 = arith.constant 0 : index
    %c0_10 = arith.constant 0 : index
    %c0_11 = arith.constant 0 : index
    %22 = vector.load %arg5[%c0_9, %c0_10, %c0_11] : memref<1x1x768xf32, #tpu.memory_space<vmem>>, vector<1x1x768xf32>
    %23 = vector.shape_cast %22 : vector<1x1x768xf32> to vector<1x768xf32>
    %24 = vector.broadcast %23 : vector<1x768xf32> to vector<8x768xf32>
    %25 = arith.addf %21, %24 : vector<8x768xf32>
    %26 = vector.extract_strided_slice %25 {offsets = [0, 0], sizes = [8, 256], strides = [1, 1]} : vector<8x768xf32> to vector<8x256xf32>
    %27 = vector.extract_strided_slice %25 {offsets = [0, 256], sizes = [8, 256], strides = [1, 1]} : vector<8x768xf32> to vector<8x256xf32>
    %28 = vector.extract_strided_slice %25 {offsets = [0, 512], sizes = [8, 256], strides = [1, 1]} : vector<8x768xf32> to vector<8x256xf32>
    %29 = vector.extract_strided_slice %26 {offsets = [0, 0], sizes = [8, 128], strides = [1, 1]} : vector<8x256xf32> to vector<8x128xf32>
    %30 = vector.extract_strided_slice %27 {offsets = [0, 0], sizes = [8, 128], strides = [1, 1]} : vector<8x256xf32> to vector<8x128xf32>
    %31 = vector.extract_strided_slice %28 {offsets = [0, 0], sizes = [8, 128], strides = [1, 1]} : vector<8x256xf32> to vector<8x128xf32>
    %cst_12 = arith.constant dense<0.000000e+00> : vector<8x8xf32>
    %32 = tpu.matmul %29, %30, %cst_12 {dimension_numbers = #tpu.dot_dimension_numbers<[1], [1], [0], [0], [0, 0, 1, 0], [], []>} : vector<8x128xf32>, vector<8x128xf32>, vector<8x8xf32> -> vector<8x8xf32>
    %c0_13 = arith.constant 0 : index
    %c0_14 = arith.constant 0 : index
    %c0_15 = arith.constant 0 : index
    %c0_16 = arith.constant 0 : index
    %33 = vector.load %arg8[%c0_13, %c0_14, %c0_15, %c0_16] : memref<1x2x128x8xf32, #tpu.memory_space<vmem>>, vector<1x1x128x8xf32>
    %34 = vector.shape_cast %33 : vector<1x1x128x8xf32> to vector<128x8xf32>
    %cst_17 = arith.constant dense<0.000000e+00> : vector<8x8xf32>
    %35 = tpu.matmul %29, %34, %cst_17 {dimension_numbers = #tpu.dot_dimension_numbers<[1], [0], [0], [1], [0, 0, 1, 1], [], []>} : vector<8x128xf32>, vector<128x8xf32>, vector<8x8xf32> -> vector<8x8xf32>
    %36 = arith.addf %32, %35 : vector<8x8xf32>
    %cst_18 = arith.constant -1.000000e+04 : f32
    %37 = vector.broadcast %cst_18 : f32 to vector<8x8xf32>
    %38 = arith.select %11, %37, %36 : vector<8x8xi1>, vector<8x8xf32>
    %cst_19 = arith.constant dense<0xFF800000> : vector<8xf32>
    %39 = vector.multi_reduction <maximumf>, %38, %cst_19 [1] : vector<8x8xf32> to vector<8xf32>
    %40 = vector.shape_cast %39 : vector<8xf32> to vector<8x1xf32>
    %41 = vector.broadcast %40 : vector<8x1xf32> to vector<8x8xf32>
    %42 = arith.subf %38, %41 : vector<8x8xf32>
    %43 = math.exp %42 : vector<8x8xf32>
    %cst_20 = arith.constant dense<0.000000e+00> : vector<8xf32>
    %44 = vector.multi_reduction <add>, %43, %cst_20 [1] : vector<8x8xf32> to vector<8xf32>
    %45 = vector.shape_cast %44 : vector<8xf32> to vector<8x1xf32>
    %46 = tpu.reciprocal %45 {approx = true} : vector<8x1xf32> -> vector<8x1xf32>
    %47 = vector.broadcast %46 : vector<8x1xf32> to vector<8x8xf32>
    %48 = arith.mulf %43, %47 : vector<8x8xf32>
    %cst_21 = arith.constant dense<0.000000e+00> : vector<8x128xf32>
    %49 = tpu.matmul %48, %31, %cst_21 {dimension_numbers = #tpu.dot_dimension_numbers<[1], [0], [0], [1], [0, 0, 1, 1], [], []>} : vector<8x8xf32>, vector<8x128xf32>, vector<8x128xf32> -> vector<8x128xf32>
    %50 = vector.shape_cast %48 : vector<8x8xf32> to vector<8x8x1xf32>
    %c0_22 = arith.constant 0 : index
    %c0_23 = arith.constant 0 : index
    %c0_24 = arith.constant 0 : index
    %c0_25 = arith.constant 0 : index
    %c0_26 = arith.constant 0 : index
    %51 = vector.load %arg9[%c0_22, %c0_23, %c0_24, %c0_25, %c0_26] : memref<1x2x8x8x128xf32, #tpu.memory_space<vmem>>, vector<1x1x8x8x128xf32>
    %52 = vector.shape_cast %51 : vector<1x1x8x8x128xf32> to vector<8x8x128xf32>
    %53 = vector.broadcast %50 : vector<8x8x1xf32> to vector<8x8x128xf32>
    %54 = arith.mulf %53, %52 : vector<8x8x128xf32>
    %cst_27 = arith.constant dense<0.000000e+00> : vector<8x128xf32>
    %55 = vector.multi_reduction <add>, %54, %cst_27 [1] : vector<8x8x128xf32> to vector<8x128xf32>
    %56 = arith.addf %49, %55 : vector<8x128xf32>
    %57 = vector.extract_strided_slice %26 {offsets = [0, 128], sizes = [8, 128], strides = [1, 1]} : vector<8x256xf32> to vector<8x128xf32>
    %58 = vector.extract_strided_slice %27 {offsets = [0, 128], sizes = [8, 128], strides = [1, 1]} : vector<8x256xf32> to vector<8x128xf32>
    %59 = vector.extract_strided_slice %28 {offsets = [0, 128], sizes = [8, 128], strides = [1, 1]} : vector<8x256xf32> to vector<8x128xf32>
    %cst_28 = arith.constant dense<0.000000e+00> : vector<8x8xf32>
    %60 = tpu.matmul %57, %58, %cst_28 {dimension_numbers = #tpu.dot_dimension_numbers<[1], [1], [0], [0], [0, 0, 1, 0], [], []>} : vector<8x128xf32>, vector<8x128xf32>, vector<8x8xf32> -> vector<8x8xf32>
    %c0_29 = arith.constant 0 : index
    %c1 = arith.constant 1 : index
    %c0_30 = arith.constant 0 : index
    %c0_31 = arith.constant 0 : index
    %61 = vector.load %arg8[%c0_29, %c1, %c0_30, %c0_31] : memref<1x2x128x8xf32, #tpu.memory_space<vmem>>, vector<1x1x128x8xf32>
    %62 = vector.shape_cast %61 : vector<1x1x128x8xf32> to vector<128x8xf32>
    %cst_32 = arith.constant dense<0.000000e+00> : vector<8x8xf32>
    %63 = tpu.matmul %57, %62, %cst_32 {dimension_numbers = #tpu.dot_dimension_numbers<[1], [0], [0], [1], [0, 0, 1, 1], [], []>} : vector<8x128xf32>, vector<128x8xf32>, vector<8x8xf32> -> vector<8x8xf32>
    %64 = arith.addf %60, %63 : vector<8x8xf32>
    %cst_33 = arith.constant -1.000000e+04 : f32
    %65 = vector.broadcast %cst_33 : f32 to vector<8x8xf32>
    %66 = arith.select %11, %65, %64 : vector<8x8xi1>, vector<8x8xf32>
    %cst_34 = arith.constant dense<0xFF800000> : vector<8xf32>
    %67 = vector.multi_reduction <maximumf>, %66, %cst_34 [1] : vector<8x8xf32> to vector<8xf32>
    %68 = vector.shape_cast %67 : vector<8xf32> to vector<8x1xf32>
    %69 = vector.broadcast %68 : vector<8x1xf32> to vector<8x8xf32>
    %70 = arith.subf %66, %69 : vector<8x8xf32>
    %71 = math.exp %70 : vector<8x8xf32>
    %cst_35 = arith.constant dense<0.000000e+00> : vector<8xf32>
    %72 = vector.multi_reduction <add>, %71, %cst_35 [1] : vector<8x8xf32> to vector<8xf32>
    %73 = vector.shape_cast %72 : vector<8xf32> to vector<8x1xf32>
    %74 = tpu.reciprocal %73 {approx = true} : vector<8x1xf32> -> vector<8x1xf32>
    %75 = vector.broadcast %74 : vector<8x1xf32> to vector<8x8xf32>
    %76 = arith.mulf %71, %75 : vector<8x8xf32>
    %cst_36 = arith.constant dense<0.000000e+00> : vector<8x128xf32>
    %77 = tpu.matmul %76, %59, %cst_36 {dimension_numbers = #tpu.dot_dimension_numbers<[1], [0], [0], [1], [0, 0, 1, 1], [], []>} : vector<8x8xf32>, vector<8x128xf32>, vector<8x128xf32> -> vector<8x128xf32>
    %78 = vector.shape_cast %76 : vector<8x8xf32> to vector<8x8x1xf32>
    %c0_37 = arith.constant 0 : index
    %c1_38 = arith.constant 1 : index
    %c0_39 = arith.constant 0 : index
    %c0_40 = arith.constant 0 : index
    %c0_41 = arith.constant 0 : index
    %79 = vector.load %arg9[%c0_37, %c1_38, %c0_39, %c0_40, %c0_41] : memref<1x2x8x8x128xf32, #tpu.memory_space<vmem>>, vector<1x1x8x8x128xf32>
    %80 = vector.shape_cast %79 : vector<1x1x8x8x128xf32> to vector<8x8x128xf32>
    %81 = vector.broadcast %78 : vector<8x8x1xf32> to vector<8x8x128xf32>
    %82 = arith.mulf %81, %80 : vector<8x8x128xf32>
    %cst_42 = arith.constant dense<0.000000e+00> : vector<8x128xf32>
    %83 = vector.multi_reduction <add>, %82, %cst_42 [1] : vector<8x8x128xf32> to vector<8x128xf32>
    %84 = arith.addf %77, %83 : vector<8x128xf32>
    %85 = tpu.concatenate %56, %84 in 1 : vector<8x128xf32>, vector<8x128xf32> -> vector<8x256xf32>
    %c0_43 = arith.constant 0 : index
    %c0_44 = arith.constant 0 : index
    %c0_45 = arith.constant 0 : index
    %86 = vector.load %arg6[%c0_43, %c0_44, %c0_45] : memref<1x256x128xf32, #tpu.memory_space<vmem>>, vector<1x256x128xf32>
    %87 = vector.shape_cast %86 : vector<1x256x128xf32> to vector<256x128xf32>
    %cst_46 = arith.constant dense<0.000000e+00> : vector<8x128xf32>
    %88 = tpu.matmul %85, %87, %cst_46 {dimension_numbers = #tpu.dot_dimension_numbers<[1], [0], [0], [1], [0, 0, 1, 1], [], []>} : vector<8x256xf32>, vector<256x128xf32>, vector<8x128xf32> -> vector<8x128xf32>
    %c0_47 = arith.constant 0 : index
    %c0_48 = arith.constant 0 : index
    %c0_49 = arith.constant 0 : index
    %89 = vector.load %arg7[%c0_47, %c0_48, %c0_49] : memref<1x1x128xf32, #tpu.memory_space<vmem>>, vector<1x1x128xf32>
    %90 = vector.shape_cast %89 : vector<1x1x128xf32> to vector<1x128xf32>
    %91 = vector.broadcast %90 : vector<1x128xf32> to vector<8x128xf32>
    %92 = arith.addf %88, %91 : vector<8x128xf32>
    %93 = arith.addf %18, %92 : vector<8x128xf32>
    %c0_50 = arith.constant 0 : index
    %c0_51 = arith.constant 0 : index
    %c0_52 = arith.constant 0 : index
    %94 = vector.load %arg10[%c0_50, %c0_51, %c0_52] : memref<1x1x128xf32, #tpu.memory_space<vmem>>, vector<1x1x128xf32>
    %95 = vector.shape_cast %94 : vector<1x1x128xf32> to vector<1x128xf32>
    %c0_53 = arith.constant 0 : index
    %c0_54 = arith.constant 0 : index
    %c0_55 = arith.constant 0 : index
    %96 = vector.load %arg11[%c0_53, %c0_54, %c0_55] : memref<1x1x128xf32, #tpu.memory_space<vmem>>, vector<1x1x128xf32>
    %97 = vector.shape_cast %96 : vector<1x1x128xf32> to vector<1x128xf32>
    %cst_56 = arith.constant dense<0.000000e+00> : vector<8xf32>
    %98 = vector.multi_reduction <add>, %93, %cst_56 [1] : vector<8x128xf32> to vector<8xf32>
    %99 = vector.shape_cast %98 : vector<8xf32> to vector<8x1xf32>
    %cst_57 = arith.constant 0.0333333351 : f32
    %100 = vector.broadcast %cst_57 : f32 to vector<8x1xf32>
    %101 = arith.mulf %99, %100 : vector<8x1xf32>
    %102 = vector.broadcast %101 : vector<8x1xf32> to vector<8x128xf32>
    %103 = arith.subf %93, %102 : vector<8x128xf32>
    %104 = vector.broadcast %16 : vector<1x128xf32> to vector<8x128xf32>
    %105 = arith.mulf %103, %104 : vector<8x128xf32>
    %106 = arith.mulf %105, %105 : vector<8x128xf32>
    %cst_58 = arith.constant dense<0.000000e+00> : vector<8xf32>
    %107 = vector.multi_reduction <add>, %106, %cst_58 [1] : vector<8x128xf32> to vector<8xf32>
    %108 = vector.shape_cast %107 : vector<8xf32> to vector<8x1xf32>
    %cst_59 = arith.constant 0.0333333351 : f32
    %109 = vector.broadcast %cst_59 : f32 to vector<8x1xf32>
    %110 = arith.mulf %108, %109 : vector<8x1xf32>
    %cst_60 = arith.constant 9.99999974E-6 : f32
    %111 = vector.broadcast %cst_60 : f32 to vector<8x1xf32>
    %112 = arith.addf %110, %111 : vector<8x1xf32>
    %113 = math.rsqrt %112 : vector<8x1xf32>
    %114 = vector.broadcast %113 : vector<8x1xf32> to vector<8x128xf32>
    %115 = arith.mulf %105, %114 : vector<8x128xf32>
    %116 = vector.broadcast %95 : vector<1x128xf32> to vector<8x128xf32>
    %117 = arith.mulf %115, %116 : vector<8x128xf32>
    %118 = vector.broadcast %97 : vector<1x128xf32> to vector<8x128xf32>
    %119 = arith.addf %117, %118 : vector<8x128xf32>
    %120 = vector.broadcast %5 : vector<8x1xf32> to vector<8x128xf32>
    %121 = arith.mulf %119, %120 : vector<8x128xf32>
    %cst_61 = arith.constant 0.000000e+00 : f32
    %122 = vector.broadcast %cst_61 : f32 to vector<1x128xf32>
    %cst_62 = arith.constant 0.000000e+00 : f32
    %123 = vector.broadcast %cst_62 : f32 to vector<1x128xf32>
    %124 = tpu.concatenate %122, %121, %123 in 0 : vector<1x128xf32>, vector<8x128xf32>, vector<1x128xf32> -> vector<10x128xf32>
    %125 = vector.extract_strided_slice %124 {offsets = [0, 0], sizes = [8, 128], strides = [1, 1]} : vector<10x128xf32> to vector<8x128xf32>
    %126 = vector.extract_strided_slice %124 {offsets = [1, 0], sizes = [8, 128], strides = [1, 1]} : vector<10x128xf32> to vector<8x128xf32>
    %127 = vector.extract_strided_slice %124 {offsets = [2, 0], sizes = [8, 128], strides = [1, 1]} : vector<10x128xf32> to vector<8x128xf32>
    %128 = tpu.concatenate %125, %126, %127 in 1 : vector<8x128xf32>, vector<8x128xf32>, vector<8x128xf32> -> vector<8x384xf32>
    %c0_63 = arith.constant 0 : index
    %c0_64 = arith.constant 0 : index
    %c0_65 = arith.constant 0 : index
    %129 = vector.load %arg12[%c0_63, %c0_64, %c0_65] : memref<1x384x128xf32, #tpu.memory_space<vmem>>, vector<1x384x128xf32>
    %130 = vector.shape_cast %129 : vector<1x384x128xf32> to vector<384x128xf32>
    %cst_66 = arith.constant dense<0.000000e+00> : vector<8x128xf32>
    %131 = tpu.matmul %128, %130, %cst_66 {dimension_numbers = #tpu.dot_dimension_numbers<[1], [0], [0], [1], [0, 0, 1, 1], [], []>} : vector<8x384xf32>, vector<384x128xf32>, vector<8x128xf32> -> vector<8x128xf32>
    %c0_67 = arith.constant 0 : index
    %c0_68 = arith.constant 0 : index
    %c0_69 = arith.constant 0 : index
    %132 = vector.load %arg13[%c0_67, %c0_68, %c0_69] : memref<1x1x128xf32, #tpu.memory_space<vmem>>, vector<1x1x128xf32>
    %133 = vector.shape_cast %132 : vector<1x1x128xf32> to vector<1x128xf32>
    %134 = vector.broadcast %133 : vector<1x128xf32> to vector<8x128xf32>
    %135 = arith.addf %131, %134 : vector<8x128xf32>
    %cst_70 = arith.constant 0.000000e+00 : f32
    %136 = vector.broadcast %cst_70 : f32 to vector<8x128xf32>
    %137 = arith.maximumf %135, %136 : vector<8x128xf32>
    %138 = vector.broadcast %5 : vector<8x1xf32> to vector<8x128xf32>
    %139 = arith.mulf %137, %138 : vector<8x128xf32>
    %cst_71 = arith.constant 0.000000e+00 : f32
    %140 = vector.broadcast %cst_71 : f32 to vector<1x128xf32>
    %cst_72 = arith.constant 0.000000e+00 : f32
    %141 = vector.broadcast %cst_72 : f32 to vector<1x128xf32>
    %142 = tpu.concatenate %140, %139, %141 in 0 : vector<1x128xf32>, vector<8x128xf32>, vector<1x128xf32> -> vector<10x128xf32>
    %143 = vector.extract_strided_slice %142 {offsets = [0, 0], sizes = [8, 128], strides = [1, 1]} : vector<10x128xf32> to vector<8x128xf32>
    %144 = vector.extract_strided_slice %142 {offsets = [1, 0], sizes = [8, 128], strides = [1, 1]} : vector<10x128xf32> to vector<8x128xf32>
    %145 = vector.extract_strided_slice %142 {offsets = [2, 0], sizes = [8, 128], strides = [1, 1]} : vector<10x128xf32> to vector<8x128xf32>
    %146 = tpu.concatenate %143, %144, %145 in 1 : vector<8x128xf32>, vector<8x128xf32>, vector<8x128xf32> -> vector<8x384xf32>
    %c0_73 = arith.constant 0 : index
    %c0_74 = arith.constant 0 : index
    %c0_75 = arith.constant 0 : index
    %147 = vector.load %arg14[%c0_73, %c0_74, %c0_75] : memref<1x384x128xf32, #tpu.memory_space<vmem>>, vector<1x384x128xf32>
    %148 = vector.shape_cast %147 : vector<1x384x128xf32> to vector<384x128xf32>
    %cst_76 = arith.constant dense<0.000000e+00> : vector<8x128xf32>
    %149 = tpu.matmul %146, %148, %cst_76 {dimension_numbers = #tpu.dot_dimension_numbers<[1], [0], [0], [1], [0, 0, 1, 1], [], []>} : vector<8x384xf32>, vector<384x128xf32>, vector<8x128xf32> -> vector<8x128xf32>
    %c0_77 = arith.constant 0 : index
    %c0_78 = arith.constant 0 : index
    %c0_79 = arith.constant 0 : index
    %150 = vector.load %arg15[%c0_77, %c0_78, %c0_79] : memref<1x1x128xf32, #tpu.memory_space<vmem>>, vector<1x1x128xf32>
    %151 = vector.shape_cast %150 : vector<1x1x128xf32> to vector<1x128xf32>
    %152 = vector.broadcast %151 : vector<1x128xf32> to vector<8x128xf32>
    %153 = arith.addf %149, %152 : vector<8x128xf32>
    %154 = vector.broadcast %5 : vector<8x1xf32> to vector<8x128xf32>
    %155 = arith.mulf %153, %154 : vector<8x128xf32>
    %156 = arith.addf %119, %155 : vector<8x128xf32>
    %c0_80 = arith.constant 0 : index
    %c0_81 = arith.constant 0 : index
    %c0_82 = arith.constant 0 : index
    %157 = vector.load %arg16[%c0_80, %c0_81, %c0_82] : memref<1x1x128xf32, #tpu.memory_space<vmem>>, vector<1x1x128xf32>
    %158 = vector.shape_cast %157 : vector<1x1x128xf32> to vector<1x128xf32>
    %c0_83 = arith.constant 0 : index
    %c0_84 = arith.constant 0 : index
    %c0_85 = arith.constant 0 : index
    %159 = vector.load %arg17[%c0_83, %c0_84, %c0_85] : memref<1x1x128xf32, #tpu.memory_space<vmem>>, vector<1x1x128xf32>
    %160 = vector.shape_cast %159 : vector<1x1x128xf32> to vector<1x128xf32>
    %cst_86 = arith.constant dense<0.000000e+00> : vector<8xf32>
    %161 = vector.multi_reduction <add>, %156, %cst_86 [1] : vector<8x128xf32> to vector<8xf32>
    %162 = vector.shape_cast %161 : vector<8xf32> to vector<8x1xf32>
    %cst_87 = arith.constant 0.0333333351 : f32
    %163 = vector.broadcast %cst_87 : f32 to vector<8x1xf32>
    %164 = arith.mulf %162, %163 : vector<8x1xf32>
    %165 = vector.broadcast %164 : vector<8x1xf32> to vector<8x128xf32>
    %166 = arith.subf %156, %165 : vector<8x128xf32>
    %167 = vector.broadcast %16 : vector<1x128xf32> to vector<8x128xf32>
    %168 = arith.mulf %166, %167 : vector<8x128xf32>
    %169 = arith.mulf %168, %168 : vector<8x128xf32>
    %cst_88 = arith.constant dense<0.000000e+00> : vector<8xf32>
    %170 = vector.multi_reduction <add>, %169, %cst_88 [1] : vector<8x128xf32> to vector<8xf32>
    %171 = vector.shape_cast %170 : vector<8xf32> to vector<8x1xf32>
    %cst_89 = arith.constant 0.0333333351 : f32
    %172 = vector.broadcast %cst_89 : f32 to vector<8x1xf32>
    %173 = arith.mulf %171, %172 : vector<8x1xf32>
    %cst_90 = arith.constant 9.99999974E-6 : f32
    %174 = vector.broadcast %cst_90 : f32 to vector<8x1xf32>
    %175 = arith.addf %173, %174 : vector<8x1xf32>
    %176 = math.rsqrt %175 : vector<8x1xf32>
    %177 = vector.broadcast %176 : vector<8x1xf32> to vector<8x128xf32>
    %178 = arith.mulf %168, %177 : vector<8x128xf32>
    %179 = vector.broadcast %158 : vector<1x128xf32> to vector<8x128xf32>
    %180 = arith.mulf %178, %179 : vector<8x128xf32>
    %181 = vector.broadcast %160 : vector<1x128xf32> to vector<8x128xf32>
    %182 = arith.addf %180, %181 : vector<8x128xf32>
    %c0_91 = arith.constant 0 : index
    %c0_92 = arith.constant 0 : index
    %183 = vector.load %arg19[%c0_91, %c0_92] : memref<8x128xf32, #tpu.memory_space<vmem>>, vector<8x128xf32>
    tpu.vector_store %arg19[%c0_91, %c0_92], %182 {strides = array<i32>} : memref<8x128xf32, #tpu.memory_space<vmem>>, vector<8x128xf32>,
    %c0_93 = arith.constant 0 : index
    %c0_94 = arith.constant 0 : index
    %c0_95 = arith.constant 0 : index
    %184 = vector.load %arg18[%c0_93, %c0_94, %c0_95] : memref<1x8x128xf32, #tpu.memory_space<vmem>>, vector<1x8x128xf32>
    %185 = vector.shape_cast %184 : vector<1x8x128xf32> to vector<8x128xf32>
    %186 = vector.shape_cast %182 : vector<8x128xf32> to vector<1x8x128xf32>
    tpu.vector_store %arg18[%c0_93, %c0_94, %c0_95], %186 {strides = array<i32>} : memref<1x8x128xf32, #tpu.memory_space<vmem>>, vector<1x8x128xf32>,
    return
  }
  func.func @transform_0(%arg0: i32, %arg1: i32) -> (i32, i32, i32) {
    %c0_i32 = arith.constant 0 : i32
    %c0_i32_0 = arith.constant 0 : i32
    %c0_i32_1 = arith.constant 0 : i32
    return %arg0, %c0_i32, %c0_i32_0 : i32, i32, i32
  }
  func.func @transform_1(%arg0: i32, %arg1: i32) -> (i32, i32, i32) {
    %c0_i32 = arith.constant 0 : i32
    %c0_i32_0 = arith.constant 0 : i32
    %c0_i32_1 = arith.constant 0 : i32
    return %arg0, %c0_i32, %c0_i32_0 : i32, i32, i32
  }
  func.func @transform_2(%arg0: i32, %arg1: i32) -> (i32, i32, i32) {
    %c0_i32 = arith.constant 0 : i32
    %c0_i32_0 = arith.constant 0 : i32
    %c0_i32_1 = arith.constant 0 : i32
    return %arg1, %c0_i32, %c0_i32_0 : i32, i32, i32
  }
  func.func @transform_3(%arg0: i32, %arg1: i32) -> (i32, i32, i32) {
    %c0_i32 = arith.constant 0 : i32
    %c0_i32_0 = arith.constant 0 : i32
    %c0_i32_1 = arith.constant 0 : i32
    return %arg1, %c0_i32, %c0_i32_0 : i32, i32, i32
  }
  func.func @transform_4(%arg0: i32, %arg1: i32) -> (i32, i32, i32) {
    %c0_i32 = arith.constant 0 : i32
    %c0_i32_0 = arith.constant 0 : i32
    %c0_i32_1 = arith.constant 0 : i32
    return %arg1, %c0_i32, %c0_i32_0 : i32, i32, i32
  }
  func.func @transform_5(%arg0: i32, %arg1: i32) -> (i32, i32, i32) {
    %c0_i32 = arith.constant 0 : i32
    %c0_i32_0 = arith.constant 0 : i32
    %c0_i32_1 = arith.constant 0 : i32
    return %arg1, %c0_i32, %c0_i32_0 : i32, i32, i32
  }
  func.func @transform_6(%arg0: i32, %arg1: i32) -> (i32, i32, i32, i32) {
    %c0_i32 = arith.constant 0 : i32
    %c0_i32_0 = arith.constant 0 : i32
    %c0_i32_1 = arith.constant 0 : i32
    %c0_i32_2 = arith.constant 0 : i32
    return %arg1, %c0_i32, %c0_i32_0, %c0_i32_1 : i32, i32, i32, i32
  }
  func.func @transform_7(%arg0: i32, %arg1: i32) -> (i32, i32, i32, i32, i32) {
    %c0_i32 = arith.constant 0 : i32
    %c0_i32_0 = arith.constant 0 : i32
    %c0_i32_1 = arith.constant 0 : i32
    %c0_i32_2 = arith.constant 0 : i32
    %c0_i32_3 = arith.constant 0 : i32
    return %arg1, %c0_i32, %c0_i32_0, %c0_i32_1, %c0_i32_2 : i32, i32, i32, i32, i32
  }
  func.func @transform_8(%arg0: i32, %arg1: i32) -> (i32, i32, i32) {
    %c0_i32 = arith.constant 0 : i32
    %c0_i32_0 = arith.constant 0 : i32
    %c0_i32_1 = arith.constant 0 : i32
    return %arg1, %c0_i32, %c0_i32_0 : i32, i32, i32
  }
  func.func @transform_9(%arg0: i32, %arg1: i32) -> (i32, i32, i32) {
    %c0_i32 = arith.constant 0 : i32
    %c0_i32_0 = arith.constant 0 : i32
    %c0_i32_1 = arith.constant 0 : i32
    return %arg1, %c0_i32, %c0_i32_0 : i32, i32, i32
  }
  func.func @transform_10(%arg0: i32, %arg1: i32) -> (i32, i32, i32) {
    %c0_i32 = arith.constant 0 : i32
    %c0_i32_0 = arith.constant 0 : i32
    %c0_i32_1 = arith.constant 0 : i32
    return %arg1, %c0_i32, %c0_i32_0 : i32, i32, i32
  }
  func.func @transform_11(%arg0: i32, %arg1: i32) -> (i32, i32, i32) {
    %c0_i32 = arith.constant 0 : i32
    %c0_i32_0 = arith.constant 0 : i32
    %c0_i32_1 = arith.constant 0 : i32
    return %arg1, %c0_i32, %c0_i32_0 : i32, i32, i32
  }
  func.func @transform_12(%arg0: i32, %arg1: i32) -> (i32, i32, i32) {
    %c0_i32 = arith.constant 0 : i32
    %c0_i32_0 = arith.constant 0 : i32
    %c0_i32_1 = arith.constant 0 : i32
    return %arg1, %c0_i32, %c0_i32_0 : i32, i32, i32
  }
  func.func @transform_13(%arg0: i32, %arg1: i32) -> (i32, i32, i32) {
    %c0_i32 = arith.constant 0 : i32
    %c0_i32_0 = arith.constant 0 : i32
    %c0_i32_1 = arith.constant 0 : i32
    return %arg1, %c0_i32, %c0_i32_0 : i32, i32, i32
  }
  func.func @transform_14(%arg0: i32, %arg1: i32) -> (i32, i32, i32) {
    %c0_i32 = arith.constant 0 : i32
    %c0_i32_0 = arith.constant 0 : i32
    %c0_i32_1 = arith.constant 0 : i32
    return %arg1, %c0_i32, %c0_i32_0 : i32, i32, i32
  }
  func.func @transform_15(%arg0: i32, %arg1: i32) -> (i32, i32, i32) {
    %c0_i32 = arith.constant 0 : i32
    %c0_i32_0 = arith.constant 0 : i32
    %c0_i32_1 = arith.constant 0 : i32
    return %arg1, %c0_i32, %c0_i32_0 : i32, i32, i32
  }
  func.func @transform_16(%arg0: i32, %arg1: i32) -> (i32, i32, i32) {
    %c0_i32 = arith.constant 0 : i32
    %c0_i32_0 = arith.constant 0 : i32
    %c0_i32_1 = arith.constant 0 : i32
    return %arg0, %c0_i32, %c0_i32_0 : i32, i32, i32
  }
}

</mosaic_0001>

<bundles_post_ra>
// kernel: tpu_custom_call.1
= control target key start
LH: loop header
LB: loop body
LE: loop exit
PB: predicated region body
PF: predicated region fallthrough
CT: control target
= control target key end

     0   :  { %s4666_s0 = inlined_call_operand.vmem [shape: f32[2,8,128], index: 0, kind: input, shape index: {}]   ;;  %s4667_s1 = inlined_call_operand.vmem [shape: f32[2,8,1], index: 1, kind: input, shape index: {}]   ;;  %s4668_s2 = inlined_call_operand.hbm [shape: f32[2,128,768], index: 2, kind: input, shape index: {}]   ;;  %s4669_s3 = inlined_call_operand.vmem [shape: f32[2,1,768], index: 3, kind: input, shape index: {}]   ;;  %s4670_s4 = inlined_call_operand.vmem [shape: f32[2,256,128], index: 4, kind: input, shape index: {}]   ;;  %s4671_s5 = inlined_call_operand.vmem [shape: f32[2,1,128], index: 5, kind: input, shape index: {}]   ;;  %s4672_s6 = inlined_call_operand.vmem [shape: f32[2,2,128,8], index: 6, kind: input, shape index: {}]   ;;  %s4673_s7 = inlined_call_operand.hbm [shape: f32[2,2,8,8,128], index: 7, kind: input, shape index: {}]   ;;  %s4674_s8 = inlined_call_operand.vmem [shape: f32[2,1,128], index: 8, kind: input, shape index: {}]   ;;  %s4675_s9 = inlined_call_operand.vmem [shape: f32[2,1,128], index: 9, kind: input, shape index: {}]   ;;  %s4676_s10 = inlined_call_operand.hbm [shape: f32[2,384,128], index: 10, kind: input, shape index: {}]   ;;  %s4677_s11 = inlined_call_operand.vmem [shape: f32[2,1,128], index: 11, kind: input, shape index: {}]   ;;  %s4678_s12 = inlined_call_operand.hbm [shape: f32[2,384,128], index: 12, kind: input, shape index: {}]   ;;  %s4679_s13 = inlined_call_operand.vmem [shape: f32[2,1,128], index: 13, kind: input, shape index: {}]   ;;  %s4680_s14 = inlined_call_operand.vmem [shape: f32[2,1,128], index: 14, kind: input, shape index: {}]   ;;  %s4681_s15 = inlined_call_operand.vmem [shape: f32[2,1,128], index: 15, kind: input, shape index: {}]   ;;  %s4682_s16 = inlined_call_operand.hbm [shape: f32[2,8,128], index: 16, kind: output, shape index: {}]  }
   0x1   :  { %4707 = sst [smem:[#allocation34_spill]] %s4666_s0 }
   0x2   :  { %4708 = sst [smem:[#allocation35_spill]] %s4667_s1 }
   0x3   :  { %4709 = sst [smem:[#allocation36_spill]] %s4668_s2 }
   0x4   :  { %4710 = sst [smem:[#allocation37_spill]] %s4669_s3 }
   0x5   :  { %4711 = sst [smem:[#allocation38_spill]] %s4670_s4 }
   0x6   :  { %4712 = sst [smem:[#allocation39_spill]] %s4671_s5 }
   0x7   :  { %4713 = sst [smem:[#allocation40_spill]] %s4672_s6 }
   0x8   :  { %4714 = sst [smem:[#allocation41_spill]] %s4673_s7 }
   0x9   :  { %4715 = sst [smem:[#allocation42_spill]] %s4674_s8 }
   0xa   :  { %4716 = sst [smem:[#allocation43_spill]] %s4675_s9 }
   0xb   :  { %4717 = sst [smem:[#allocation44_spill]] %s4676_s10 }
   0xc   :  { %4718 = sst [smem:[#allocation45_spill]] %s4677_s11 }
   0xd   :  { %4719 = sst [smem:[#allocation46_spill]] %s4678_s12 }
   0xe   :  { %4720 = sst [smem:[#allocation47_spill]] %s4679_s13 }
   0xf   :  { %4721 = sst [smem:[#allocation48_spill]] %s4680_s14 }
  0x10   :  { %4722 = sst [smem:[#allocation49_spill]] %s4681_s15 }
  0x11   :  { %4723 = sst [smem:[#allocation50_spill]] %s4682_s16 }
  0x12   :  { %21 = vsyncpa [#allocation4], 0 }
  0x13   :  { %23 = vsyncpa [#allocation4 + $0x1], 0 }
  0x14   :  { %24 = vsyncpa [#allocation7], 0 }
  0x15   :  { %26 = vsyncpa [#allocation7 + $0x1], 0 }
  0x16   :  { %27 = vsyncpa [#allocation10], 0 }
  0x17   :  { %29 = vsyncpa [#allocation10 + $0x1], 0 }
  0x18   :  { %30 = vsyncpa [#allocation5], 0 }
  0x19   :  { %32 = vsyncpa [#allocation5 + $0x1], 0  ;;  %s3791_s21 = smov 0   ;;  %s3793_s22 = smov 0  }
  0x1a   :  { %s3795_s23 = smov 0   ;;  %s3797_s24 = smov 0  }
  0x1b   :  { %s3799_s25 = smov 0   ;;  %s3801_s26 = smov 0  }
  0x1c   :  { %s3803_s27 = smov 0   ;;  %s3805_s28 = smov 0  }
  0x1d   :  { %s3807_s29 = smov 0   ;;  %s3809_s30 = smov 0  }
  0x1e   :  { %s3811_s0 = smov 0  }
  0x1f LB: > { %4724 = sst [smem:[#allocation16_spill]] %s3652_s21  ;;  %s3845_s17 = sadd.s32 4294967295, %s3692_s0   ;;  %s3692_s0 = sphi %s3811_s0, %s38_s0   ;;  %s3688_s30 = sphi %s3809_s30, %s4796_s30   ;;  %s3684_s29 = sphi %s3807_s29, %s4795_s29   ;;  %s3680_s28 = sphi %s3805_s28, %s4794_s28   ;;  %s3676_s27 = sphi %s3803_s27, %s4793_s27   ;;  %s3672_s26 = sphi %s3801_s26, %s4792_s26   ;;  %s3668_s25 = sphi %s3799_s25, %s4791_s25   ;;  %s3664_s24 = sphi %s3797_s24, %s4790_s24   ;;  %s3660_s23 = sphi %s3795_s23, %s4789_s23   ;;  %s3656_s22 = sphi %s3793_s22, %s4788_s22   ;;  %s3652_s21 = sphi %s3791_s21, %s4787_s21  }
  0x20   : > { %4725 = sst [smem:[#allocation17_spill]] %s3656_s22  ;;  %s2901_s18 = sadd.s32 4294967294, %s3692_s0  }
  0x21   : > { %4726 = sst [smem:[#allocation18_spill]] %s3660_s23  ;;  %s47_s19 = sadd.s32 1, %s3684_s29 }
  0x22   : > { %4727 = sst [smem:[#allocation19_spill]] %s3668_s25  ;;  %s50_s20 = sadd.s32 1, %s3688_s30 }
  0x23   : > { %4728 = sst [smem:[#allocation20_spill]] %s3672_s26  ;;  %p48_p0 = scmp.ge.s32.totalorder %s47_s19, 2 }
  0x24   : > { %4729 = sst [smem:[#allocation21_spill]] %s3680_s28  ;;  %s109_s16 = sadd.s32 1, %s3672_s26 }
  0x25   : > { %4730 = sst [smem:[#allocation22_spill]] %s3684_s29  ;;  %p116_p1 = scmp.ne.s32.totalorder %s3672_s26, %s3668_s25 }
  0x26   : > { %4731 = sst [smem:[#allocation23_spill]] %s3688_s30  ;;  %p117_p2 = scmp.eq.s32.totalorder %s3692_s0, 0 }
  0x27   : > { %4732 = sst [smem:[#allocation24_spill]] %s3692_s0  ;;  %s4798_s19 = smov (%p48_p0, %s47_s19), 0 }
  0x28   : > { %4733 = sst [smem:[#allocation25_spill]] %s4798_s19  ;;  %s4800_s20 = smov (!%p48_p0, %s50_s20), %s3688_s30 }
  0x29   : > { %s106_s15 = ssub.s32 %s3684_s29, %s4798_s19  ;;  %p3859_p3 = por %p117_p2, %p116_p1 }
  0x2a   : > { %p52_p4 = scmp.ge.s32.totalorder %s4800_s20, 2  ;;  %p107_p5 = scmp.eq.s32.totalorder %s106_s15, 0 }
  0x2b   : > { %p122_p6 = scmp.ne.s32.totalorder %s3668_s25, %s3664_s24  ;;  %p123_p7 = scmp.eq.s32.totalorder %s3845_s17, 0 }
  0x2c   : > { %s4802_s20 = smov (%p52_p4, %s4800_s20), 0  ;;  %s473_s9 = sadd.s32 1, %s3660_s23 }
  0x2d   : > { %4735 = sst [smem:[#allocation26_spill]] %s4802_s20  ;;  %p3870_p8 = por %p123_p7, %p122_p6 }
  0x2e   : > { %s3868_s13 = scalar_select %p107_p5, %s3672_s26, %s109_s16  }
  0x2f   : > { %s470_s11 = ssub.s32 %s3688_s30, %s4802_s20  ;;  %p483_p10 = scmp.ne.s32.totalorder %s3660_s23, %s3656_s22 }
  0x30   : > { %4736 = sst [smem:[#allocation27_spill]] %s3868_s13  ;;  %p471_p9 = scmp.eq.s32.totalorder %s470_s11, 0 }
  0x31   : > { %p484_p11 = scmp.eq.s32.totalorder %s3845_s17, 3  ;;  %p489_p13 = scmp.ne.s32.totalorder %s3656_s22, %s3652_s21 }
  0x32   : > { %s3881_s15 = scalar_select %p471_p9, %s3660_s23, %s473_s9  }
  0x33   : > { %p3883_p12 = por %p484_p11, %p483_p10  ;;  %p490_p0 = scmp.eq.s32.totalorder %s2901_s18, 3 }
  0x34   : > { %4738 = sst [smem:[#allocation28_spill]] %s3881_s15  ;;  %p3342_p1 = scmp.lt.s32.totalorder %s3692_s0, 4 }
  0x35   : > { %s4739_s24 = scalar_select %p3883_p12, 1, 0 }
  0x36   : > { %s3891_s16 = sand.u32 1, %s3672_s26   ;;  %p3893_p2 = por %p490_p0, %p489_p13 }
  0x37   : > { %4740 = sst [smem:[#allocation29_spill]] %s4739_s24  ;;  %s574_s11 = sand.u32 1, %s3692_s0  }
  0x38   : > { %s4741_s13 = scalar_select %p3893_p2, 1, 0 }
  0x39   : > { %p3900_p4 = pnand %p3342_p1, %p3859_p3  ;;  %s2905_s9 = sshll.u32 %s3891_s16, 7 }
  0x3a   : > { %4742 = sst [smem:[#allocation30_spill]] %s4741_s13  ;;  %s2962_s30 = sshll.u32 %s3684_s29, 11 }
  0x3b   : > { %s4744_s7 = sld [smem:[#allocation41_spill]]  ;;  %s578_s23 = scalar_lea.vmem [#allocation6], %s2905_s9 }
  0x3c   : > { %s585_s21 = sshll.u32 %s578_s23, 4  ;;  %p2910_p5 = scmp.ge.s32.totalorder %s3692_s0, 1  ;;  %s586_s21 = int_to_ptr.vmem [resolvable:$true] %s585_s21 }
  0x3d   : > { %s3910_s24 = scalar_lea.sflag [#allocation7], %s574_s11  ;;  %p3454_p6 = pneg %p3900_p4 }
  0x3e   : > { %s3465_s14 = scalar_lea.vmem %s586_s21, 2048  ;;  %s3694_s13 = smov [#allocation6]  }
  0x3f   : > { %p3466_p3 = scmp.ne.s32.totalorder %s586_s21, %s3465_s14  ;;  %s3470_s8 = sshll.u32 %s3694_s13, 4  ;;  %s3471_s8 = int_to_ptr.vmem [resolvable:$false] %s3470_s8 }
  0x40   : > { %s3472_s6 = scalar_lea.vmem %s3471_s8, 4096  ;;  %p3473_p10 = scmp.lt.s32.totalorder %s586_s21, %s3471_s8 }
  0x41   : > { %s584_s26 = scalar_lea.hbm %s4744_s7, %s2962_s30  ;;  %p3468_p7 = pnand %p3466_p3, %p3454_p6 }
  0x42   : > { %p3474_p11 = scmp.lt.s32.totalorder %s3472_s6, %s3465_s14 }
  0x43   : > { %p3469_p9 = pneg %p3468_p7 }
  0x44   : > { %p3475_p13 = por %p3474_p11, %p3473_p10 }
  0x46   : > { %p3476_p0 = pnand %p3475_p13, %p3469_p9 }
  0x48   : > { %3479 = shalt.err (!%p3476_p0)
}
  0x49   : > { %s4693_s23 = smov 128   ;;  %s4695_s30 = smov 8  }
  0x4a   : > { %3331 = dma.hbm_to_vmem [thread:$0]  (!%p3900_p4), %s584_s26, 2048, %s586_s21, %s3910_s24, %s4693_s23, %s4693_s23, %s4695_s30  }
  0x4b   : > { %p671_p1 = scmp.lt.s32.totalorder %s3692_s0, 5  ;;  %s3306_s8 = smul.u32 768, %s3891_s16 }
  0x4c   : > { %s3307_s13 = smul.u32 12288, %s3684_s29  ;;  %s4746_s2 = sld [smem:[#allocation36_spill]] }
  0x4d   : > { %p3926_p3 = pnand %p2910_p5, %p671_p1  ;;  %s528_s18 = scalar_lea.vmem [#allocation3], %s3306_s8 }
  0x4e   : > { %s535_s14 = sshll.u32 %s528_s18, 4  ;;  %s3308_s7 = smul.u32 384, %s3891_s16  ;;  %s536_s14 = int_to_ptr.vmem [resolvable:$true] %s535_s14 }
  0x4f   : > { %s525_s3 = scalar_lea.sflag [#allocation4], %s3891_s16  ;;  %s3493_s5 = scalar_lea.vmem %s536_s14, 12288 }
  0x50   : > { %p3494_p7 = scmp.ne.s32.totalorder %s536_s14, %s3493_s5  ;;  %s3697_s21 = smov [#allocation3]  }
  0x51   : > { %s3498_s26 = sshll.u32 %s3697_s21, 4  ;;  %s3499_s26 = int_to_ptr.vmem [resolvable:$false] %s3498_s26 }
  0x52   : > { %s534_s9 = scalar_lea.hbm %s4746_s2, %s3307_s13  ;;  %p3496_p9 = pnand %p3494_p7, %p3454_p6 }
  0x53   : > { %s3500_s23 = scalar_lea.vmem %s3499_s26, 24576  ;;  %p3501_p10 = scmp.lt.s32.totalorder %s536_s14, %s3499_s26 }
  0x54   : > { %p3497_p5 = pneg %p3496_p9  ;;  %p3502_p11 = scmp.lt.s32.totalorder %s3500_s23, %s3493_s5 }
  0x56   : > { %p3503_p13 = por %p3502_p11, %p3501_p10 }
  0x58   : > { %p3504_p0 = pnand %p3503_p13, %p3497_p5 }
  0x5a   : > { %3507 = shalt.err (!%p3504_p0)
}
  0x5b   : > { %s3698_s8 = smov 768   ;;  %s3699_s13 = smov 48  }
  0x5c   : > { %3328 = dma.hbm_to_vmem [thread:$0]  (!%p3900_p4), %s534_s9, 12288, %s536_s14, %s525_s3, %s3698_s8, %s3698_s8, %s3699_s13  }
  0x5d   : > { %s3309_s15 = smul.u32 6144, %s3684_s29  ;;  %s611_s11 = scalar_lea.vmem [#allocation8], %s3308_s7 }
  0x5e   : > { %s618_s18 = sshll.u32 %s611_s11, 4  ;;  %s4747_s10 = sld [smem:[#allocation44_spill]]  ;;  %s619_s18 = int_to_ptr.vmem [resolvable:$true] %s618_s18 }
  0x5f   : > { %s3521_s5 = scalar_lea.vmem %s619_s18, 6144  ;;  %s3700_s23 = smov [#allocation8]  }
  0x60   : > { %p3522_p1 = scmp.ne.s32.totalorder %s619_s18, %s3521_s5  ;;  %s3526_s2 = sshll.u32 %s3700_s23, 4  ;;  %s3527_s2 = int_to_ptr.vmem [resolvable:$false] %s3526_s2 }
  0x61   : > { %s3528_s0 = scalar_lea.vmem %s3527_s2, 12288  ;;  %p3529_p5 = scmp.lt.s32.totalorder %s619_s18, %s3527_s2 }
  0x62   : > { %p3524_p7 = pnand %p3522_p1, %p3454_p6  ;;  %p3530_p10 = scmp.lt.s32.totalorder %s3528_s0, %s3521_s5 }
  0x64   : > { %s617_s26 = scalar_lea.hbm %s4747_s10, %s3309_s15  ;;  %p3525_p9 = pneg %p3524_p7 }
  0x65   : > { %p3531_p11 = por %p3530_p10, %p3529_p5 }
  0x67   : > { %p3532_p13 = pnand %p3531_p11, %p3525_p9 }
  0x69   : > { %3535 = shalt.err (!%p3532_p13)
}
  0x6a   : > { %s4748_s3 = smov 8   ;;  %s4749_s30 = smov 128  }
  0x6b   : > { %3334 = dma.hbm_to_vmem [thread:$0]  (!%p3900_p4), %s617_s26, 6144, %s619_s18, %s3910_s24, %s4749_s30, %s4749_s30, %s4748_s3  }
  0x6c   : > { %s4750_s12 = sld [smem:[#allocation46_spill]]  ;;  %s638_s2 = scalar_lea.vmem [#allocation9], %s3308_s7 }
  0x6d   : > { %s645_s0 = sshll.u32 %s638_s2, 4  ;;  %s635_s13 = scalar_lea.sflag [#allocation10], %s3891_s16  ;;  %s646_s0 = int_to_ptr.vmem [resolvable:$true] %s645_s0 }
  0x6e   : > { %s3549_s11 = scalar_lea.vmem %s646_s0, 6144  ;;  %s3701_s21 = smov [#allocation9]  }
  0x6f   : > { %p3550_p0 = scmp.ne.s32.totalorder %s646_s0, %s3549_s11  ;;  %s3554_s5 = sshll.u32 %s3701_s21, 4  ;;  %s3555_s5 = int_to_ptr.vmem [resolvable:$false] %s3554_s5 }
  0x70   : > { %s3556_s23 = scalar_lea.vmem %s3555_s5, 12288  ;;  %p3557_p9 = scmp.lt.s32.totalorder %s646_s0, %s3555_s5 }
  0x71   : > { %p3552_p1 = pnand %p3550_p0, %p3454_p6  ;;  %p3558_p5 = scmp.lt.s32.totalorder %s3556_s23, %s3549_s11 }
  0x72   : > { %s644_s8 = scalar_lea.hbm %s4750_s12, %s3309_s15 }
  0x73   : > { %p3553_p7 = pneg %p3552_p1  ;;  %p3559_p10 = por %p3558_p5, %p3557_p9 }
  0x75   : > { %p3560_p11 = pnand %p3559_p10, %p3553_p7 }
  0x77   : > { %3563 = shalt.err (!%p3560_p11)
}
  0x78   : > { %3337 = dma.hbm_to_vmem [thread:$0]  (!%p3900_p4), %s644_s8, 6144, %s646_s0, %s635_s13, %s4749_s30, %s4749_s30, %s4748_s3  }
  0x79   : > { %675 = sbr.rel (%p3926_p3) target bundleno = 2990 (0xbae), region = 84 }
  0x7e   : > { %s677_s7 = sand.u32 1, %s3668_s25  }
  0x7f   : > { %s3312_s24 = smul.u32 768, %s677_s7  ;;  %s678_s16 = scalar_lea.sflag [#allocation4], %s677_s7 }
  0x81   : > { %s3974_s15 = scalar_lea.vmem [#allocation3], %s3312_s24 }
  0x82   : > { %3635 = dma.done.wait (%p3870_p8), %s678_s16, 12288  }
  0x83   : > { %3637 = vsyncadd (%p3870_p8), %s678_s16, 4294955008  ;;  %s686_s20 = sand.u32 1, %s3845_s17   ;;  %s2911_s18 = sshll.u32 %s677_s7, 7 }
  0x84   : > { %s687_s26 = scalar_lea.sflag [#allocation7], %s686_s20  ;;  %s3981_s3 = scalar_lea.vmem [#allocation6], %s2911_s18 }
  0x85   : > { %4751 = sst [smem:[#allocation31_spill]] %s3981_s3 }
  0x86   : > { %3639 = dma.done.wait (%p3870_p8), %s687_s26, 8192  }
  0x87   : > { %3641 = vsyncadd (%p3870_p8), %s687_s26, 4294959104  ;;  %s3313_s6 = smul.u32 384, %s677_s7  ;;  %s705_s9 = scalar_lea.sflag [#allocation10], %s677_s7 }
  0x89   : > { %s3987_s30 = scalar_lea.vmem [#allocation8], %s3313_s6  ;;  %s3989_s14 = scalar_lea.vmem [#allocation9], %s3313_s6 }
  0x8a   : > { %4752 = sst [smem:[#allocation32_spill]] %s3987_s30 }
  0x8b   : > { %4753 = sst [smem:[#allocation33_spill]] %s3989_s14 }
  0x8c   : > { %3643 = dma.done.wait (%p3870_p8), %s705_s9, 6144  }
  0x8d   : > { %3645 = vsyncadd (%p3870_p8), %s705_s9, 4294961152  ;;  %s4699_s17 = sand.u32 1, %s3656_s22   ;;  %p815_p4 = scmp.lt.s32.totalorder %s3680_s28, 1 }
  0x8e   : > { %s3999_s8 = sshll.u32 %s4699_s17, 3  ;;  %p823_p6 = scmp.lt.s32.totalorder %s3676_s27, 1 }
  0x8f   : > { %s816_s2 = scalar_select %p815_p4, %s3680_s28, 1 }
  0x90   : > { %s4004_s0 = scalar_select %p823_p6, %s3676_s27, 1 }
  0x91   : > { %s2913_s19 = sshll.u32 %s816_s2, 3  ;;  %s4754_s21 = sld [smem:[#allocation34_spill]] }
  0x92   : > { %s4755_s1 = sld [smem:[#allocation35_spill]]  ;;  %s3314_s16 = smul.u32 6, %s4004_s0 }
  0x93   : > { %s2963_s20 = sshll.u32 %s4004_s0, 8  ;;  %s4756_s4 = sld [smem:[#allocation38_spill]] }
  0x94   : > { %s4758_s25 = sld [smem:[#allocation37_spill]]  ;;  %s814_s7 = scalar_lea.vmem [#allocation11], %s3999_s8 }
  0x95   : > { %s4759_s23 = sld [smem:[#allocation40_spill]]  ;;  %p2919_p8 = scmp.ne.s32.totalorder %s3676_s27, 0 }
  0x96   : > { %s4760_s22 = sld [smem:[#allocation42_spill]] }
  0x97   : > { %s818_s5 = scalar_lea.vmem %s4754_s21, %s2913_s19  ;;  %s4761_s28 = sld [smem:[#allocation43_spill]] }
  0x98   : > { %s822_s24 = scalar_lea.vmem %s4755_s1, %s2913_s19  ;;  %s4762_s9 = sld [smem:[#allocation45_spill]] }
  0x99   : > { %s4017_s6 = scalar_lea.vmem %s4756_s4, %s2963_s20  ;;  %s4765_s1 = sld [smem:[#allocation49_spill]] }
  0x9a   : > { %s4026_s13 = scalar_lea.vmem %s4758_s25, %s3314_s16  ;;  %s4763_s16 = sld [smem:[#allocation47_spill]] }
  0x9b   : > { %s4031_s19 = scalar_lea.vmem %s4759_s23, %s2963_s20  ;;  %s4764_s20 = sld [smem:[#allocation48_spill]] }
  0x9c   : > { %s842_s18 = scalar_lea.vmem %s4760_s22, %s4004_s0 }
  0x9d   : > { %s845_s14 = scalar_lea.vmem %s4761_s28, %s4004_s0  ;;  %861 = sbr.rel (%p2919_p8) target bundleno = 164 (0xa4), region = 104 }
  0x9e   : > { %s848_s12 = scalar_lea.vmem %s4762_s9, %s4004_s0 }
  0x9f   : > { %s857_s22 = scalar_lea.vmem %s4765_s1, %s4004_s0 }
  0xa0   : > { %s851_s2 = scalar_lea.vmem %s4763_s16, %s4004_s0 }
  0xa1   : > { %s854_s21 = scalar_lea.vmem %s4764_s20, %s4004_s0 }
  0xa2   : > { %v862_v0 = vld [vmem:[%s818_s5] sm:$0xff] }
  0xa3   : > { %863 = vst [vmem:[#allocation2] sm:$0xff] %v862_v0 }
  0xa4 PF: > { %v4059_v1 = vld [vmem:[%s822_s24] sm:$0xff]  ;;  %v1005_v3 = vld [vmem:[%s3974_s15 + $0x2d0] sm:$0xff]  ;;  %v3702_v4 = vmov 0   ;;  %v1008_v5 = vld [vmem:[%s3974_s15 + $0x2e8] sm:$0xff]  ;;  %vm3704_vm0 = vmmov 0   ;;  %vm1413_vm1 = vcmask 64512  }
  0xa5   : > { %v1006_v2 = vld [vmem:[%s3974_s15 + $0x2d8] sm:$0xff]  ;;  %3439 = vset.pattern.permute.xlu0 %v3702_v4  ;;  %v1000_v6 = vld [vmem:[%s3974_s15 + $0x2a8] sm:$0xff]  ;;  %v1007_v7 = vld [vmem:[%s3974_s15 + $0x2e0] sm:$0xff]  ;;  %1114 = vmatprep.subr.mxu1 %v1008_v5  ;;  %v3703_v5 = vmov 0.0   ;;  %s4766_s4 = sld [smem:[#allocation31_spill]]  ;;  %vm1553_vm3 = vcmask 1041409  }
  0xa6   : > { %1043 = vmatprep.subr.mxu0 %v1006_v2  ;;  %900 = vperm.xlu0 %3439, %v4059_v1   ;;  %v999_v8 = vld [vmem:[%s3974_s15 + $0x2a0] sm:$0xff]  ;;  %v1002_v9 = vld [vmem:[%s3974_s15 + $0x2b8] sm:$0xff]  ;;  %v1001_v11 = vld [vmem:[%s3974_s15 + $0x2b0] sm:$0xff]  ;;  %vm1555_vm4 = vcmask 1042434   ;;  %vm1557_vm5 = vcmask 1043459   ;;  %vm1559_vm6 = vcmask 1044484  }
  0xa7   : > { %1044 = vmatpush1.msra.mxu0 %v1005_v3  ;;  %v994_v10 = vld [vmem:[%s3974_s15 + $0x278] sm:$0xff]  ;;  %v993_v12 = vld [vmem:[%s3974_s15 + $0x270] sm:$0xff]  ;;  %1115 = vmatpush1.msra.mxu1 %v1007_v7  ;;  %v996_v13 = vld [vmem:[%s3974_s15 + $0x288] sm:$0xff]  ;;  %vm1561_vm7 = vcmask 1045509   ;;  %vm1563_vm8 = vcmask 1046534   ;;  %vm1565_vm9 = vcmask 1047559  }
  0xa8   : > { %1045 = vmatprep.subr.mxu0 %v1000_v6  ;;  %v988_v14 = vld [vmem:[%s3974_s15 + $0x248] sm:$0xff]  ;;  %1116 = vmatprep.subr.mxu1 %v1002_v9  ;;  %v995_v15 = vld [vmem:[%s3974_s15 + $0x280] sm:$0xff]  ;;  %v990_v17 = vld [vmem:[%s3974_s15 + $0x258] sm:$0xff]  ;;  %s4769_s30 = sld [smem:[#allocation32_spill]]  ;;  %vm2162_vm11 = vcmask 1040384   ;;  %vm2167_vm12 = vcmask 1046528  }
  0xa9   : > { %1046 = vmatpush1.msra.mxu0 %v999_v8  ;;  %v987_v16 = vld [vmem:[%s3974_s15 + $0x240] sm:$0xff]  ;;  %1117 = vmatpush1.msra.mxu1 %v1001_v11  ;;  %v982_v18 = vld [vmem:[%s3974_s15 + $0x218] sm:$0xff]  ;;  %v989_v19 = vld [vmem:[%s3974_s15 + $0x250] sm:$0xff]  ;;  %s4770_s5 = sld [smem:[#allocation33_spill]]  ;;  %vm2172_vm13 = vcmask 1045504  }
  0xaa   : > { %1047 = vmatprep.subr.mxu0 %v994_v10  ;;  %1118 = vmatprep.subr.mxu1 %v996_v13  ;;  %v981_v20 = vld [vmem:[%s3974_s15 + $0x210] sm:$0xff]  ;;  %v984_v21 = vld [vmem:[%s3974_s15 + $0x228] sm:$0xff]  ;;  %v983_v23 = vld [vmem:[%s3974_s15 + $0x220] sm:$0xff]  ;;  %s4777_s25 = sld [smem:[#allocation21_spill]] }
  0xab   : > { %1048 = vmatpush1.msra.mxu0 %v993_v12  ;;  %1119 = vmatpush1.msra.mxu1 %v995_v15  ;;  %v976_v22 = vld [vmem:[%s3974_s15 + $0x1e8] sm:$0xff]  ;;  %v975_v24 = vld [vmem:[%s3974_s15 + $0x1e0] sm:$0xff]  ;;  %v978_v25 = vld [vmem:[%s3974_s15 + $0x1f8] sm:$0xff]  ;;  %s4778_s16 = sld [smem:[#allocation17_spill]] }
  0xac   : > { %1049 = vmatprep.subr.mxu0 %v988_v14  ;;  %1120 = vmatprep.subr.mxu1 %v990_v17  ;;  %v970_v26 = vld [vmem:[%s3974_s15 + $0x1b8] sm:$0xff]  ;;  %v977_v27 = vld [vmem:[%s3974_s15 + $0x1f0] sm:$0xff]  ;;  %v972_v29 = vld [vmem:[%s3974_s15 + $0x1c8] sm:$0xff] }
  0xad   : > { %1050 = vmatpush1.msra.mxu0 %v987_v16  ;;  %1121 = vmatpush1.msra.mxu1 %v989_v19  ;;  %v969_v28 = vld [vmem:[%s3974_s15 + $0x1b0] sm:$0xff]  ;;  %v964_v30 = vld [vmem:[%s3974_s15 + $0x188] sm:$0xff]  ;;  %v971_v31 = vld [vmem:[%s3974_s15 + $0x1c0] sm:$0xff] }
  0xae   : > { %1051 = vmatprep.subr.mxu0 %v982_v18  ;;  %1122 = vmatprep.subr.mxu1 %v984_v21  ;;  %v963_v32 = vld [vmem:[%s3974_s15 + $0x180] sm:$0xff]  ;;  %v966_v33 = vld [vmem:[%s3974_s15 + $0x198] sm:$0xff]  ;;  %v965_v35 = vld [vmem:[%s3974_s15 + $0x190] sm:$0xff] }
  0xaf   : > { %1052 = vmatpush1.msra.mxu0 %v981_v20  ;;  %1123 = vmatpush1.msra.mxu1 %v983_v23  ;;  %v958_v34 = vld [vmem:[%s3974_s15 + $0x158] sm:$0xff]  ;;  %v957_v36 = vld [vmem:[%s3974_s15 + $0x150] sm:$0xff]  ;;  %v960_v37 = vld [vmem:[%s3974_s15 + $0x168] sm:$0xff] }
  0xb0   : > { %1053 = vmatprep.subr.mxu0 %v976_v22  ;;  %1124 = vmatprep.subr.mxu1 %v978_v25  ;;  %v952_v38 = vld [vmem:[%s3974_s15 + $0x128] sm:$0xff]  ;;  %v959_v39 = vld [vmem:[%s3974_s15 + $0x160] sm:$0xff]  ;;  %v954_v41 = vld [vmem:[%s3974_s15 + $0x138] sm:$0xff]  ;;  %s2959_s28 = sshll.u32 %s4777_s25, 7 }
  0xb1   : > { %1054 = vmatpush1.msra.mxu0 %v975_v24  ;;  %1125 = vmatpush1.msra.mxu1 %v977_v27  ;;  %v951_v40 = vld [vmem:[%s3974_s15 + $0x120] sm:$0xff]  ;;  %v946_v42 = vld [vmem:[%s3974_s15 + $0xf8] sm:$0xff]  ;;  %v953_v43 = vld [vmem:[%s3974_s15 + $0x130] sm:$0xff] }
  0xb2   : > { %1055 = vmatprep.subr.mxu0 %v970_v26  ;;  %1126 = vmatprep.subr.mxu1 %v972_v29  ;;  %v945_v44 = vld [vmem:[%s3974_s15 + $0xf0] sm:$0xff]  ;;  %v948_v45 = vld [vmem:[%s3974_s15 + $0x108] sm:$0xff]  ;;  %v947_v47 = vld [vmem:[%s3974_s15 + $0x100] sm:$0xff] }
  0xb3   : > { %1056 = vmatpush1.msra.mxu0 %v969_v28  ;;  %1127 = vmatpush1.msra.mxu1 %v971_v31  ;;  %v940_v46 = vld [vmem:[%s3974_s15 + $0xc8] sm:$0xff]  ;;  %v939_v48 = vld [vmem:[%s3974_s15 + $0xc0] sm:$0xff]  ;;  %v942_v49 = vld [vmem:[%s3974_s15 + $0xd8] sm:$0xff] }
  0xb4   : > { %1057 = vmatprep.subr.mxu0 %v964_v30  ;;  %1128 = vmatprep.subr.mxu1 %v966_v33  ;;  %v934_v50 = vld [vmem:[%s3974_s15 + $0x98] sm:$0xff]  ;;  %v941_v51 = vld [vmem:[%s3974_s15 + $0xd0] sm:$0xff]  ;;  %v936_v53 = vld [vmem:[%s3974_s15 + $0xa8] sm:$0xff] }
  0xb5   : > { %1058 = vmatpush1.msra.mxu0 %v963_v32  ;;  %1129 = vmatpush1.msra.mxu1 %v965_v35  ;;  %v933_v52 = vld [vmem:[%s3974_s15 + $0x90] sm:$0xff]  ;;  %v928_v54 = vld [vmem:[%s3974_s15 + $0x68] sm:$0xff]  ;;  %v935_v55 = vld [vmem:[%s3974_s15 + $0xa0] sm:$0xff] }
  0xb6   : > { %1059 = vmatprep.subr.mxu0 %v958_v34  ;;  %1130 = vmatprep.subr.mxu1 %v960_v37  ;;  %v927_v56 = vld [vmem:[%s3974_s15 + $0x60] sm:$0xff]  ;;  %v930_v57 = vld [vmem:[%s3974_s15 + $0x78] sm:$0xff]  ;;  %v929_v59 = vld [vmem:[%s3974_s15 + $0x70] sm:$0xff] }
  0xb7   : > { %1060 = vmatpush1.msra.mxu0 %v957_v36  ;;  %1131 = vmatpush1.msra.mxu1 %v959_v39  ;;  %v922_v58 = vld [vmem:[%s3974_s15 + $0x38] sm:$0xff]  ;;  %v921_v60 = vld [vmem:[%s3974_s15 + $0x30] sm:$0xff]  ;;  %v924_v61 = vld [vmem:[%s3974_s15 + $0x48] sm:$0xff] }
  0xb8   : > { %1061 = vmatprep.subr.mxu0 %v952_v38  ;;  %1132 = vmatprep.subr.mxu1 %v954_v41  ;;  %v916_v62 = vld [vmem:[%s3974_s15 + $0x8] sm:$0xff]  ;;  %v923_v63 = vld [vmem:[%s3974_s15 + $0x40] sm:$0xff]  ;;  %v918_v2 = vld [vmem:[%s3974_s15 + $0x18] sm:$0xff] }
  0xb9   : > { %1062 = vmatpush1.msra.mxu0 %v951_v40  ;;  %1133 = vmatpush1.msra.mxu1 %v953_v43  ;;  %v915_v0 = vld [vmem:[%s3974_s15] sm:$0xff]  ;;  %v917_v3 = vld [vmem:[%s3974_s15 + $0x10] sm:$0xff]  ;;  %v1010_v4 = vld [vmem:[%s3974_s15 + $0x2f8] sm:$0xff] }
  0xba   : > { %1063 = vmatprep.subr.mxu0 %v946_v42  ;;  %1134 = vmatprep.subr.mxu1 %v948_v45  ;;  %v864_v6 = vld [vmem:[#allocation2] sm:$0xff]  ;;  %v1009_v8 = vld [vmem:[%s3974_s15 + $0x2f0] sm:$0xff]  ;;  %v1004_v9 = vld [vmem:[%s3974_s15 + $0x2c8] sm:$0xff] }
  0xbb   : > { %1064 = vmatpush1.msra.mxu0 %v945_v44  ;;  %1135 = vmatpush1.msra.mxu1 %v947_v47  ;;  %v1271_v10 = vld [vmem:[%s4031_s19 + $0x78] sm:$0xff]  ;;  %v1003_v11 = vld [vmem:[%s3974_s15 + $0x2c0] sm:$0xff]  ;;  %v998_v12 = vld [vmem:[%s3974_s15 + $0x298] sm:$0xff] }
  0xbc   : > { %1065 = vmatprep.subr.mxu0 %v940_v46  ;;  %1136 = vmatprep.subr.mxu1 %v942_v49  ;;  %v1270_v13 = vld [vmem:[%s4031_s19 + $0x70] sm:$0xff]  ;;  %v997_v14 = vld [vmem:[%s3974_s15 + $0x290] sm:$0xff]  ;;  %v1269_v16 = vld [vmem:[%s4031_s19 + $0x68] sm:$0xff] }
  0xbd   : > { %1066 = vmatpush1.msra.mxu0 %v939_v48  ;;  %1137 = vmatpush1.msra.mxu1 %v941_v51  ;;  %v992_v15 = vld [vmem:[%s3974_s15 + $0x268] sm:$0xff]  ;;  %v991_v17 = vld [vmem:[%s3974_s15 + $0x260] sm:$0xff]  ;;  %v986_v18 = vld [vmem:[%s3974_s15 + $0x238] sm:$0xff] }
  0xbe   : > { %1067 = vmatprep.subr.mxu0 %v934_v50  ;;  %1138 = vmatprep.subr.mxu1 %v936_v53  ;;  %v1268_v19 = vld [vmem:[%s4031_s19 + $0x60] sm:$0xff]  ;;  %v985_v20 = vld [vmem:[%s3974_s15 + $0x230] sm:$0xff]  ;;  %v980_v21 = vld [vmem:[%s3974_s15 + $0x208] sm:$0xff] }
  0xbf   : > { %1068 = vmatpush1.msra.mxu0 %v933_v52  ;;  %1139 = vmatpush1.msra.mxu1 %v935_v55  ;;  %v1267_v22 = vld [vmem:[%s4031_s19 + $0x58] sm:$0xff]  ;;  %v979_v23 = vld [vmem:[%s3974_s15 + $0x200] sm:$0xff]  ;;  %v974_v24 = vld [vmem:[%s3974_s15 + $0x1d8] sm:$0xff]  ;;  %v903_v55 = vlaneseq }
  0xc0   : > { %1069 = vmatprep.subr.mxu0 %v928_v54  ;;  %1140 = vmatprep.subr.mxu1 %v930_v57  ;;  %v1266_v25 = vld [vmem:[%s4031_s19 + $0x50] sm:$0xff]  ;;  %v973_v26 = vld [vmem:[%s3974_s15 + $0x1d0] sm:$0xff]  ;;  %v1265_v28 = vld [vmem:[%s4031_s19 + $0x48] sm:$0xff] }
  0xc1   : > { %1070 = vmatpush1.msra.mxu0 %v927_v56  ;;  %1141 = vmatpush1.msra.mxu1 %v929_v59  ;;  %v968_v27 = vld [vmem:[%s3974_s15 + $0x1a8] sm:$0xff]  ;;  %v967_v29 = vld [vmem:[%s3974_s15 + $0x1a0] sm:$0xff]  ;;  %v962_v30 = vld [vmem:[%s3974_s15 + $0x178] sm:$0xff]  ;;  %v4209_v56 = vshrl.u32 %v903_v55, 7 }
  0xc2   : > { %1071 = vmatprep.subr.mxu0 %v922_v58  ;;  %1142 = vmatprep.subr.mxu1 %v924_v61  ;;  %v1264_v31 = vld [vmem:[%s4031_s19 + $0x40] sm:$0xff]  ;;  %v961_v32 = vld [vmem:[%s3974_s15 + $0x170] sm:$0xff]  ;;  %v956_v33 = vld [vmem:[%s3974_s15 + $0x148] sm:$0xff] }
  0xc3   : > { %1072 = vmatpush1.msra.mxu0 %v921_v60  ;;  %1143 = vmatpush1.msra.mxu1 %v923_v63  ;;  %v1263_v34 = vld [vmem:[%s4031_s19 + $0x38] sm:$0xff]  ;;  %v955_v35 = vld [vmem:[%s3974_s15 + $0x140] sm:$0xff]  ;;  %v950_v36 = vld [vmem:[%s3974_s15 + $0x118] sm:$0xff]  ;;  %v4212_v57 = vsub.s32 2, %v4209_v56  ;;  %v4216_v59 = vsub.s32 0, %v4209_v56  ;;  %v4219_v60 = vsub.s32 3, %v4209_v56 }
  0xc4   : > { %1073 = vmatprep.subr.mxu0 %v916_v62  ;;  %866 = vxpose.xlu0.b32.start.end [1/1] (short) (narrow) %v4059_v1, 8  ;;  %v1262_v37 = vld [vmem:[%s4031_s19 + $0x30] sm:$0xff]  ;;  %v949_v38 = vld [vmem:[%s3974_s15 + $0x110] sm:$0xff]  ;;  %v1261_v40 = vld [vmem:[%s4031_s19 + $0x28] sm:$0xff]  ;;  %v4224_v63 = vsub.s32 1, %v4209_v56 }
  0xc5   : > { %1074 = vmatpush1.msra.mxu0 %v915_v0  ;;  %1144 = vmatprep.subr.mxu1 %v918_v2  ;;  %v944_v39 = vld [vmem:[%s3974_s15 + $0xe8] sm:$0xff]  ;;  %v943_v41 = vld [vmem:[%s3974_s15 + $0xe0] sm:$0xff]  ;;  %v938_v42 = vld [vmem:[%s3974_s15 + $0xb8] sm:$0xff] }
  0xc6   : > { %1107 = vmatprep.mubr.f32.mxu0 %v3703_v5  ;;  %1145 = vmatpush1.msra.mxu1 %v917_v3  ;;  %v1260_v43 = vld [vmem:[%s4031_s19 + $0x20] sm:$0xff]  ;;  %v937_v44 = vld [vmem:[%s3974_s15 + $0xb0] sm:$0xff]  ;;  %v932_v45 = vld [vmem:[%s3974_s15 + $0x88] sm:$0xff] }
  0xc7   : > { %1178 = vmatprep.mubr.f32.mxu1 %v3703_v5  ;;  %1185 = vmatprep.subr.mxu0 %v1010_v4  ;;  %v1259_v46 = vld [vmem:[%s4031_s19 + $0x18] sm:$0xff]  ;;  %v931_v47 = vld [vmem:[%s3974_s15 + $0x80] sm:$0xff]  ;;  %v926_v48 = vld [vmem:[%s3974_s15 + $0x58] sm:$0xff] }
  0xc8   : > { %3146 = vmatprep.subr.mxu1 %v3703_v5  ;;  %v1258_v49 = vld [vmem:[%s4031_s19 + $0x10] sm:$0xff]  ;;  %v925_v50 = vld [vmem:[%s3974_s15 + $0x50] sm:$0xff]  ;;  %v919_v52 = vld [vmem:[%s3974_s15 + $0x20] sm:$0xff] }
  0xc9   : > { %v920_v51 = vld [vmem:[%s3974_s15 + $0x28] sm:$0xff]  ;;  %v1257_v53 = vld [vmem:[%s4031_s19 + $0x8] sm:$0xff]  ;;  %v1256_v54 = vld [vmem:[%s4031_s19] sm:$0xff]  ;;  %s4767_s15 = sld [smem:[#allocation39_spill]] }
  0xca   : > { %v1011_v58 = vld [vmem:[%s4026_s13] sm:$0x3f]  ;;  %vm4499_vm14 = vmneg %vm2162_vm11 }
  0xcb   : > { %v1016_v61 = vrot.slane %v1011_v58, %v4216_v59  ;;  %v1024_v62 = vrot.slane %v1011_v58, %v4212_v57  ;;  %v1028_v0 = vrot.slane %v1011_v58, %v4219_v60 }
  0xcf   : > { %s4768_s3 = scalar_lea.vmem %s4767_s15, %s4004_s0  ;;  %s2630_s15 = sshll.u32 %s814_s7, 4  ;;  %s2631_s15 = int_to_ptr.vmem [resolvable:$true] %s2630_s15 }
  0xd0   : > { %s3564_s13 = scalar_lea.vmem %s2631_s15, 128  ;;  %s3705_s0 = smov [#allocation11]  }
  0xd1   : > { %p3565_p3 = scmp.ne.s32.totalorder %s2631_s15, %s3564_s13 }
  0xd3   : > { %p3566_p13 = pnand %p3565_p3, %p3883_p12 }
  0xd5   : > { %p3567_p0 = pneg %p3566_p13 }
 0x121   : > { %v4131_v1 = vpop.permute.xlu0 %900 }
 0x122   : > { %v4134_v7 = vmul.f32 %v4131_v1, %v864_v6 }
 0x124   : > { %1108 = vmatmul.mubr.f32.vlgmr.msra.gmra.mxu0 %v4134_v7  ;;  %1179 = vmatmul.mubr.f32.vlgmr.msra.gmra.mxu1 %v4134_v7 }
 0x125   : > { %1186 = vmatpush1.msra.mxu0 %v1009_v8  ;;  %1249 = vmatprep.mubr.f32.mxu0 %v3703_v5  ;;  %v1020_v8 = vrot.slane %v1011_v58, %v4224_v63 }
 0x126   : > { %1187 = vmatprep.subr.mxu0 %v1004_v9  ;;  %3147 = vmatpush3.msra.mxu1 %v1271_v10 }
 0x127   : > { %1188 = vmatpush1.msra.mxu0 %v1003_v11  ;;  %3148 = vmatprep.subr.mxu1 %v3703_v5 }
 0x128   : > { %1189 = vmatprep.subr.mxu0 %v998_v12  ;;  %3149 = vmatpush3.msra.mxu1 %v1270_v13  ;;  %v4240_v13 = vsub.s32 4, %v4209_v56 }
 0x129   : > { %1190 = vmatpush1.msra.mxu0 %v997_v14  ;;  %3150 = vmatprep.subr.mxu1 %v3703_v5  ;;  %v4243_v14 = vsub.s32 5, %v4209_v56 }
 0x12a   : > { %1191 = vmatprep.subr.mxu0 %v992_v15  ;;  %3151 = vmatpush3.msra.mxu1 %v1269_v16  ;;  %v1032_v15 = vrot.slane %v1011_v58, %v4240_v13 }
 0x12b   : > { %1192 = vmatpush1.msra.mxu0 %v991_v17  ;;  %3152 = vmatprep.subr.mxu1 %v3703_v5  ;;  %v1036_v16 = vrot.slane %v1011_v58, %v4243_v14  ;;  %v2928_v58 = vld [vmem:[%s4031_s19 + $0xb0] sm:$0xff] }
 0x12c   : > { %1193 = vmatprep.subr.mxu0 %v986_v18  ;;  %3153 = vmatpush3.msra.mxu1 %v1268_v19 }
 0x12d   : > { %1194 = vmatpush1.msra.mxu0 %v985_v20  ;;  %3154 = vmatprep.subr.mxu1 %v3703_v5 }
 0x12e   : > { %1195 = vmatprep.subr.mxu0 %v980_v21  ;;  %3155 = vmatpush3.msra.mxu1 %v1267_v22 }
 0x12f   : > { %1196 = vmatpush1.msra.mxu0 %v979_v23  ;;  %3156 = vmatprep.subr.mxu1 %v3703_v5 }
 0x130   : > { %1197 = vmatprep.subr.mxu0 %v974_v24  ;;  %3157 = vmatpush3.msra.mxu1 %v1266_v25 }
 0x131   : > { %1198 = vmatpush1.msra.mxu0 %v973_v26  ;;  %3158 = vmatprep.subr.mxu1 %v3703_v5 }
 0x132   : > { %1199 = vmatprep.subr.mxu0 %v968_v27  ;;  %3159 = vmatpush3.msra.mxu1 %v1265_v28 }
 0x133   : > { %1200 = vmatpush1.msra.mxu0 %v967_v29  ;;  %3160 = vmatprep.subr.mxu1 %v3703_v5 }
 0x134   : > { %1201 = vmatprep.subr.mxu0 %v962_v30  ;;  %3161 = vmatpush3.msra.mxu1 %v1264_v31 }
 0x135   : > { %1202 = vmatpush1.msra.mxu0 %v961_v32  ;;  %3162 = vmatprep.subr.mxu1 %v3703_v5 }
 0x136   : > { %1203 = vmatprep.subr.mxu0 %v956_v33  ;;  %3163 = vmatpush3.msra.mxu1 %v1263_v34 }
 0x137   : > { %1204 = vmatpush1.msra.mxu0 %v955_v35  ;;  %3164 = vmatprep.subr.mxu1 %v3703_v5 }
 0x138   : > { %1205 = vmatprep.subr.mxu0 %v950_v36  ;;  %3165 = vmatpush3.msra.mxu1 %v1262_v37 }
 0x139   : > { %1206 = vmatpush1.msra.mxu0 %v949_v38  ;;  %3166 = vmatprep.subr.mxu1 %v3703_v5 }
 0x13a   : > { %1207 = vmatprep.subr.mxu0 %v944_v39  ;;  %3167 = vmatpush3.msra.mxu1 %v1261_v40 }
 0x13b   : > { %1208 = vmatpush1.msra.mxu0 %v943_v41  ;;  %3168 = vmatprep.subr.mxu1 %v3703_v5  ;;  %v2937_v41 = vld [vmem:[%s4031_s19 + $0xf8] sm:$0xff] }
 0x13c   : > { %1209 = vmatprep.subr.mxu0 %v938_v42  ;;  %3169 = vmatpush3.msra.mxu1 %v1260_v43  ;;  %v2936_v42 = vld [vmem:[%s4031_s19 + $0xf0] sm:$0xff] }
 0x13d   : > { %1210 = vmatpush1.msra.mxu0 %v937_v44  ;;  %3170 = vmatprep.subr.mxu1 %v3703_v5  ;;  %v1469_v44 = vsub.s32 6, %v4209_v56 }
 0x13e   : > { %1211 = vmatprep.subr.mxu0 %v932_v45  ;;  %3171 = vmatpush3.msra.mxu1 %v1259_v46  ;;  %v2935_v45 = vld [vmem:[%s4031_s19 + $0xe8] sm:$0xff]  ;;  %v2934_v46 = vld [vmem:[%s4031_s19 + $0xe0] sm:$0xff] }
 0x13f   : > { %1212 = vmatpush1.msra.mxu0 %v931_v47  ;;  %3172 = vmatprep.subr.mxu1 %v3703_v5 }
 0x140   : > { %1213 = vmatprep.subr.mxu0 %v926_v48  ;;  %3173 = vmatpush3.msra.mxu1 %v1258_v49  ;;  %v882_v21 = vpop.trf.xlu0  ;;  %v1476_v48 = vsub.s32 7, %v4209_v56  ;;  %v2933_v49 = vld [vmem:[%s4031_s19 + $0xd8] sm:$0xff] }
 0x141   : > { %1214 = vmatpush1.msra.mxu0 %v925_v50  ;;  %3174 = vmatprep.subr.mxu1 %v3703_v5  ;;  %v906_v22 = vrot.slane %v882_v21, %v4216_v59  ;;  %v2932_v50 = vld [vmem:[%s4031_s19 + $0xd0] sm:$0xff]  ;;  %v2047_v56 = vld [vmem:[%s4017_s6 + $0xd8] sm:$0xff] }
 0x142   : > { %1215 = vmatprep.subr.mxu0 %v920_v51  ;;  %3175 = vmatpush3.msra.mxu1 %v1257_v53  ;;  %v2930_v53 = vld [vmem:[%s4031_s19 + $0xc0] sm:$0xff] }
 0x143   : > { %1216 = vmatpush1.msra.mxu0 %v919_v52  ;;  %3176 = vmatprep.subr.mxu1 %v3703_v5  ;;  %v4250_v24 = vmul.f32 %v906_v22, %v4131_v1  ;;  %v2931_v52 = vld [vmem:[%s4031_s19 + $0xc8] sm:$0xff] }
 0x144   : > { %1250 = vmatmul.mubr.f32.vlgmr.msra.gmra.mxu0 %v4134_v7  ;;  %3181 = vmatprep.subr.mxu0 %v3703_v5 }
 0x145   : > { %3177 = vmatpush3.msra.mxu1 %v1256_v54  ;;  %3178 = vmatprep.mubr.msk.f32.mxu1 %vm3704_vm0, %v3703_v5  ;;  %vm908_vm2 = vcmp.eq.f32.partialorder %v4250_v24, 0.0  ;;  %v2929_v54 = vld [vmem:[%s4031_s19 + $0xb8] sm:$0xff] }
 0x146   : > { %3226 = vmatprep.subr.mxu1 %v3703_v5  ;;  %3183 = vmatprep.mubr.msk.f32.mxu0 %vm3704_vm0, %v3703_v5 }
 0x1e4   : > { %v1109_v2 = vpop.f32.mrf.mxu0  ;;  %v1180_v3 = vpop.f32.mrf.mxu1 }
 0x1e5   : > { %v1110_v4 = vadd.f32 %v1109_v2, %v1016_v61  ;;  %v1181_v6 = vadd.f32 %v1180_v3, %v1024_v62  ;;  %v2927_v61 = vld [vmem:[%s4031_s19 + $0xa8] sm:$0xff]  ;;  %v2926_v62 = vld [vmem:[%s4031_s19 + $0xa0] sm:$0xff]  ;;  %v2924_v2 = vld [vmem:[%s4031_s19 + $0x90] sm:$0xff] }
 0x1e6   : > { %v1182_v9 = vpop.f32.mrf.mxu1  ;;  %v1111_v10 = vpop.f32.mrf.mxu0  ;;  %v2923_v3 = vld [vmem:[%s4031_s19 + $0x88] sm:$0xff] }
 0x1e7   : > { %v1183_v11 = vadd.f32 %v1182_v9, %v1028_v0  ;;  %3179 = vmatmul.mubr.f32.vlgmr.msra.gmra.mxu1 %v1110_v4  ;;  %3182 = vmatpush3.xpose.msra.mxu0 %v1181_v6  ;;  %v4231_v12 = vadd.f32 %v1111_v10, %v1020_v8  ;;  %v2925_v0 = vld [vmem:[%s4031_s19 + $0x98] sm:$0xff] }
 0x1e8   : > { %3228 = vmatprep.mubr.msk.f32.mxu1 %vm3704_vm0, %v3703_v5  ;;  %3186 = vmatprep.subr.mxu0 %v3703_v5 }
 0x1e9   : > { %3227 = vmatpush3.xpose.msra.mxu1 %v1183_v11 }
 0x1ea   : > { %3184 = vmatmul.mubr.f32.vlgmr.msra.gmra.mxu0 %v1110_v4  ;;  %3231 = vmatprep.subr.mxu1 %v3703_v5  ;;  %v2922_v4 = vld [vmem:[%s4031_s19 + $0x80] sm:$0xff] }
 0x1eb   : > { %3188 = vmatprep.mubr.msk.f32.mxu0 %vm3704_vm0, %v3703_v5 }
 0x1ec   : > { %3229 = vmatmul.mubr.f32.vlgmr.msra.gmra.mxu1 %v4231_v12 }
 0x1ed   : > { %3233 = vmatprep.mubr.msk.f32.mxu1 %vm3704_vm0, %v3703_v5 }
 0x204   : > { %v1251_v17 = vpop.f32.mrf.mxu0 }
 0x205   : > { %v1252_v18 = vadd.f32 %v1251_v17, %v1032_v15 }
 0x206   : > { %v1253_v19 = vpop.f32.mrf.mxu0 }
 0x207   : > { %v1254_v20 = vadd.f32 %v1253_v19, %v1036_v16  ;;  %3187 = vmatpush3.msra.mxu0 %v1252_v18 }
 0x208   : > { %3191 = vmatprep.subr.mxu0 %v3703_v5 }
 0x209   : > { %3232 = vmatpush3.msra.mxu1 %v1254_v20 }
 0x2a7   : > { %v1338_v23 = vpop.f32.mrf.mxu1 }
 0x2a9   : > { %v3180_v25 = vpop.f32.mrf.mxu1 }
 0x2aa   : > { %v1408_v26 = vpop.f32.mrf.mxu0 }
 0x2ab   : > { %v1409_v27 = vadd.f32 %v1408_v26, %v1338_v23 }
 0x2ac   : > { %v3185_v28 = vpop.f32.mrf.mxu0  ;;  %v4252_v29 = vpop.f32.mrf.mxu1 }
 0x2ad   : > { %v1412_v30 = vsel %vm908_vm2, -10000.0, %v1409_v27 }
 0x2ae   : > { %v3230_v31 = vpop.f32.mrf.mxu1  ;;  %v1414_v32 = vsel %vm1413_vm1, %v1412_v30, -inf }
 0x2af   : > { %1415 = vmax.xlane.f32.xlu1 %v1414_v32 }
 0x338   : > { %v1416_v33 = vpop.xlane.xlu1 %1415 }
 0x339   : > { %v1417_v34 = vsub.f32 %v1412_v30, %v1416_v33 }
 0x33b   : > { %v1418_v35 = vmul.f32 1.442695, %v1417_v34 }
 0x33d   : > { %3440 = vpow2.f32 %v1418_v35  ;;  %v2050_v35 = vld [vmem:[%s4017_s6 + $0xf0] sm:$0xff] }
 0x34a   : > { %v3441_v36 = vpop.eup %3440 }
 0x34b   : > { %v1420_v37 = vsel %vm1413_vm1, %v3441_v36, 0.0 }
 0x34c   : > { %1421 = vadd.xlane.f32.xlu1 %v1420_v37  ;;  %v2048_v37 = vld [vmem:[%s4017_s6 + $0xe0] sm:$0xff] }
 0x3d5   : > { %v1422_v38 = vpop.xlane.xlu1 %1421 }
 0x3d6   : > { %3442 = vrcp.f32 %v1422_v38  ;;  %v2032_v38 = vld [vmem:[%s4017_s6 + $0x60] sm:$0xff] }
 0x3e3   : > { %v3443_v39 = vpop.eup %3442 }
 0x3e4   : > { %v4259_v40 = vmul.f32 %v3443_v39, %v3441_v36  ;;  %v2033_v36 = vld [vmem:[%s4017_s6 + $0x68] sm:$0xff]  ;;  %v2031_v39 = vld [vmem:[%s4017_s6 + $0x58] sm:$0xff] }
 0x3e6   : > { %3189 = vmatmul.mubr.msk.f32.vlgmr.msra.gmra.mxu0 %vm1413_vm1, %v4259_v40  ;;  %v1428_v43 = vrot.slane %v4259_v40, %v4216_v59  ;;  %v1470_v47 = vrot.slane %v4259_v40, %v1469_v44  ;;  %v1477_v51 = vrot.slane %v4259_v40, %v1476_v48  ;;  %v1435_v21 = vrot.slane %v4259_v40, %v4224_v63 }
 0x3e7   : > { %3192 = vmatpush3.msra.mxu0 %v2937_v41  ;;  %3223 = vmatprep.mubr.msk.f32.mxu0 %vm3704_vm0, %v3703_v5  ;;  %v1442_v22 = vrot.slane %v4259_v40, %v4212_v57  ;;  %v1449_v23 = vrot.slane %v4259_v40, %v4219_v60  ;;  %v1456_v24 = vrot.slane %v4259_v40, %v4240_v13  ;;  %v2030_v41 = vld [vmem:[%s4017_s6 + $0x50] sm:$0xff] }
 0x3e8   : > { %3193 = vmatprep.subr.mxu0 %v3703_v5  ;;  %1430 = vbcast.lane.b32.xlu0 %v1428_v43, 256  ;;  %v1463_v25 = vrot.slane %v4259_v40, %v4243_v14  ;;  %v2046_v40 = vld [vmem:[%s4017_s6 + $0xd0] sm:$0xff]  ;;  %v2029_v43 = vld [vmem:[%s4017_s6 + $0x48] sm:$0xff] }
 0x3e9   : > { %3194 = vmatpush3.msra.mxu0 %v2936_v42  ;;  %v2045_v42 = vld [vmem:[%s4017_s6 + $0xc8] sm:$0xff] }
 0x3ea   : > { %3195 = vmatprep.subr.mxu0 %v3703_v5 }
 0x3eb   : > { %3196 = vmatpush3.msra.mxu0 %v2935_v45  ;;  %v2028_v45 = vld [vmem:[%s4017_s6 + $0x40] sm:$0xff] }
 0x3ec   : > { %3197 = vmatprep.subr.mxu0 %v3703_v5  ;;  %1472 = vbcast.lane.b32.xlu0 %v1470_v47, 256  ;;  %v2027_v47 = vld [vmem:[%s4017_s6 + $0x38] sm:$0xff] }
 0x3ed   : > { %3198 = vmatpush3.msra.mxu0 %v2934_v46  ;;  %v2043_v46 = vld [vmem:[%s4017_s6 + $0xb8] sm:$0xff] }
 0x3ee   : > { %3199 = vmatprep.subr.mxu0 %v3703_v5 }
 0x3ef   : > { %3200 = vmatpush3.msra.mxu0 %v2933_v49  ;;  %v2026_v49 = vld [vmem:[%s4017_s6 + $0x30] sm:$0xff] }
 0x3f0   : > { %3201 = vmatprep.subr.mxu0 %v3703_v5  ;;  %1479 = vbcast.lane.b32.xlu0 %v1477_v51, 256  ;;  %v2025_v51 = vld [vmem:[%s4017_s6 + $0x28] sm:$0xff] }
 0x3f1   : > { %3202 = vmatpush3.msra.mxu0 %v2932_v50  ;;  %v2041_v50 = vld [vmem:[%s4017_s6 + $0xa8] sm:$0xff] }
 0x3f2   : > { %3203 = vmatprep.subr.mxu0 %v3703_v5 }
 0x3f3   : > { %3204 = vmatpush3.msra.mxu0 %v2931_v52  ;;  %v2040_v52 = vld [vmem:[%s4017_s6 + $0xa0] sm:$0xff] }
 0x3f4   : > { %3205 = vmatprep.subr.mxu0 %v3703_v5 }
 0x3f5   : > { %3206 = vmatpush3.msra.mxu0 %v2930_v53  ;;  %v2024_v53 = vld [vmem:[%s4017_s6 + $0x20] sm:$0xff] }
 0x3f6   : > { %3207 = vmatprep.subr.mxu0 %v3703_v5 }
 0x3f7   : > { %3208 = vmatpush3.msra.mxu0 %v2929_v54  ;;  %v2039_v54 = vld [vmem:[%s4017_s6 + $0x98] sm:$0xff] }
 0x3f8   : > { %3209 = vmatprep.subr.mxu0 %v3703_v5 }
 0x3f9   : > { %3210 = vmatpush3.msra.mxu0 %v2928_v58  ;;  %v2023_v58 = vld [vmem:[%s4017_s6 + $0x18] sm:$0xff] }
 0x3fa   : > { %3211 = vmatprep.subr.mxu0 %v3703_v5 }
 0x3fb   : > { %3212 = vmatpush3.msra.mxu0 %v2927_v61  ;;  %v2038_v61 = vld [vmem:[%s4017_s6 + $0x90] sm:$0xff] }
 0x3fc   : > { %3213 = vmatprep.subr.mxu0 %v3703_v5 }
 0x3fd   : > { %3214 = vmatpush3.msra.mxu0 %v2926_v62  ;;  %v2022_v62 = vld [vmem:[%s4017_s6 + $0x10] sm:$0xff] }
 0x3fe   : > { %3215 = vmatprep.subr.mxu0 %v3703_v5 }
 0x3ff   : > { %3216 = vmatpush3.msra.mxu0 %v2925_v0  ;;  %v2037_v0 = vld [vmem:[%s4017_s6 + $0x88] sm:$0xff] }
 0x400   : > { %3217 = vmatprep.subr.mxu0 %v3703_v5 }
 0x401   : > { %3218 = vmatpush3.msra.mxu0 %v2924_v2  ;;  %v2021_v2 = vld [vmem:[%s4017_s6 + $0x8] sm:$0xff] }
 0x402   : > { %3219 = vmatprep.subr.mxu0 %v3703_v5 }
 0x403   : > { %3220 = vmatpush3.msra.mxu0 %v2923_v3  ;;  %v2036_v3 = vld [vmem:[%s4017_s6 + $0x80] sm:$0xff] }
 0x404   : > { %3221 = vmatprep.subr.mxu0 %v3703_v5 }
 0x405   : > { %3222 = vmatpush3.msra.mxu0 %v2922_v4  ;;  %v2020_v4 = vld [vmem:[%s4017_s6] sm:$0xff] }
 0x406   : > { %3224 = vmatmul.mubr.f32.vlgmr.msra.gmra.mxu0 %v4231_v12 }
 0x4a6   : > { %v4307_v6 = vpop.f32.mrf.mxu0 }
 0x4a8   : > { %v3190_v8 = vpop.f32.mrf.mxu0 }
 0x4c6   : > { %v1724_v9 = vpop.f32.mrf.mxu0 }
 0x4c7   : > { %v1795_v10 = vadd.f32 %v4252_v29, %v1724_v9 }
 0x4c8   : > { %v3225_v11 = vpop.f32.mrf.mxu0 }
 0x4c9   : > { %v1798_v15 = vsel %vm908_vm2, -10000.0, %v1795_v10 }
 0x4ca   : > { %v1799_v16 = vsel %vm1413_vm1, %v1798_v15, -inf }
 0x4cb   : > { %1800 = vmax.xlane.f32.xlu1 %v1799_v16 }
 0x554   : > { %v1801_v17 = vpop.xlane.xlu1 %1800 }
 0x555   : > { %v1802_v18 = vsub.f32 %v1798_v15, %v1801_v17 }
 0x557   : > { %v1803_v19 = vmul.f32 1.442695, %v1802_v18 }
 0x559   : > { %3444 = vpow2.f32 %v1803_v19 }
 0x566   : > { %v3445_v20 = vpop.eup %3444 }
 0x567   : > { %v1805_v12 = vsel %vm1413_vm1, %v3445_v20, 0.0 }
 0x568   : > { %1806 = vadd.xlane.f32.xlu1 %v1805_v12  ;;  %v1431_v12 = vpop.permute.xlu0 %1430 }
 0x579   : > { %1437 = vbcast.lane.b32.xlu1 %v1435_v21, 256  ;;  %v1481_v21 = vld [vmem:[%s4766_s4] sm:$0xff] }
 0x57d   : > { %1444 = vbcast.lane.b32.xlu1 %v1442_v22, 256  ;;  %v1489_v22 = vmul.f32 %v1481_v21, %v1431_v12 }
 0x581   : > { %1451 = vbcast.lane.b32.xlu1 %v1449_v23, 256 }
 0x585   : > { %1458 = vbcast.lane.b32.xlu1 %v1456_v24, 256  ;;  %v1473_v24 = vpop.permute.xlu0 %1472 }
 0x589   : > { %1465 = vbcast.lane.b32.xlu1 %v1463_v25, 256  ;;  %v1482_v25 = vld [vmem:[%s4766_s4 + $0x8] sm:$0xff] }
 0x5f1   : > { %v1807_v26 = vpop.xlane.xlu1 %1806 }
 0x5f2   : > { %3446 = vrcp.f32 %v1807_v26  ;;  %v1487_v26 = vld [vmem:[%s4766_s4 + $0x30] sm:$0xff] }
 0x5f5   : > { %v1438_v8 = vpop.permute.xlu1 %1437 }
 0x5f9   : > { %v1445_v9 = vpop.permute.xlu1 %1444 }
 0x5fd   : > { %v1452_v10 = vpop.permute.xlu1 %1451 }
 0x5ff   : > { %v3447_v27 = vpop.eup %3446 }
 0x600   : > { %v1809_v28 = vmul.f32 %v3447_v27, %v3445_v20  ;;  %v1483_v27 = vld [vmem:[%s4766_s4 + $0x10] sm:$0xff] }
 0x601   : > { %v1459_v11 = vpop.permute.xlu1 %1458 }
 0x602   : > { %3234 = vmatmul.mubr.msk.f32.vlgmr.msra.gmra.mxu1 %vm1413_vm1, %v1809_v28  ;;  %v1813_v29 = vrot.slane %v1809_v28, %v4216_v59  ;;  %v1820_v30 = vrot.slane %v1809_v28, %v4224_v63  ;;  %v1827_v31 = vrot.slane %v1809_v28, %v4212_v57  ;;  %v1834_v32 = vrot.slane %v1809_v28, %v4219_v60  ;;  %v2051_v63 = vld [vmem:[%s4017_s6 + $0xf8] sm:$0xff] }
 0x603   : > { %v1841_v33 = vrot.slane %v1809_v28, %v4240_v13  ;;  %v1848_v34 = vrot.slane %v1809_v28, %v4243_v14  ;;  %v1855_v59 = vrot.slane %v1809_v28, %v1469_v44  ;;  %v2035_v57 = vld [vmem:[%s4017_s6 + $0x78] sm:$0xff]  ;;  %v1862_v60 = vrot.slane %v1809_v28, %v1476_v48  ;;  %3007 = vmatprep.subr.mxu1 %v2051_v63  ;;  %v2034_v13 = vld [vmem:[%s4017_s6 + $0x70] sm:$0xff]  ;;  %v2049_v14 = vld [vmem:[%s4017_s6 + $0xe8] sm:$0xff] }
 0x604   : > { %1815 = vbcast.lane.b32.xlu1 %v1813_v29, 256  ;;  %3008 = vmatpush3.msra.mxu1 %v2035_v57  ;;  %v2044_v44 = vld [vmem:[%s4017_s6 + $0xc0] sm:$0xff]  ;;  %v2042_v48 = vld [vmem:[%s4017_s6 + $0xb0] sm:$0xff]  ;;  %v1484_v28 = vld [vmem:[%s4766_s4 + $0x18] sm:$0xff]  ;;  %v1497_v29 = vrot.slane %v1489_v22, 4 }
 0x605   : > { %3009 = vmatprep.subr.mxu1 %v2050_v35  ;;  %v1466_v15 = vpop.permute.xlu1 %1465  ;;  %v2939_v63 = vld [vmem:[%s4766_s4 + $0x48] sm:$0xff]  ;;  %v1488_v35 = vld [vmem:[%s4766_s4 + $0x38] sm:$0xff] }
 0x606   : > { %3010 = vmatpush3.msra.mxu1 %v2034_v13 }
 0x607   : > { %3011 = vmatprep.subr.mxu1 %v2049_v14  ;;  %v2940_v14 = vld [vmem:[%s4766_s4 + $0x50] sm:$0xff] }
 0x608   : > { %1822 = vbcast.lane.b32.xlu1 %v1820_v30, 256  ;;  %3012 = vmatpush3.msra.mxu1 %v2033_v36  ;;  %v1490_v30 = vmul.f32 %v1482_v25, %v1438_v8  ;;  %v1498_v36 = vadd.f32 %v1497_v29, %v1489_v22 }
 0x609   : > { %3013 = vmatprep.subr.mxu1 %v2048_v37 }
 0x60a   : > { %3014 = vmatpush3.msra.mxu1 %v2032_v38  ;;  %v1503_v37 = vrot.slane %v1490_v30, 4 }
 0x60b   : > { %3015 = vmatprep.subr.mxu1 %v2047_v56  ;;  %v2938_v56 = vld [vmem:[%s4766_s4 + $0x40] sm:$0xff] }
 0x60c   : > { %1829 = vbcast.lane.b32.xlu1 %v1827_v31, 256  ;;  %3016 = vmatpush3.msra.mxu1 %v2031_v39  ;;  %v1485_v31 = vld [vmem:[%s4766_s4 + $0x20] sm:$0xff]  ;;  %v2941_v39 = vld [vmem:[%s4766_s4 + $0x58] sm:$0xff] }
 0x60d   : > { %3017 = vmatprep.subr.mxu1 %v2046_v40  ;;  %v1493_v13 = vmul.f32 %v1485_v31, %v1459_v11 }
 0x60e   : > { %3018 = vmatpush3.msra.mxu1 %v2030_v41 }
 0x60f   : > { %3019 = vmatprep.subr.mxu1 %v2045_v42 }
 0x610   : > { %1836 = vbcast.lane.b32.xlu1 %v1834_v32, 256  ;;  %3020 = vmatpush3.msra.mxu1 %v2029_v43  ;;  %v1495_v32 = vmul.f32 %v1487_v26, %v1473_v24  ;;  %v2942_v43 = vld [vmem:[%s4766_s4 + $0x60] sm:$0xff] }
 0x611   : > { %3021 = vmatprep.subr.mxu1 %v2044_v44 }
 0x612   : > { %3022 = vmatpush3.msra.mxu1 %v2028_v45  ;;  %v1533_v40 = vrot.slane %v1495_v32, 4 }
 0x613   : > { %3023 = vmatprep.subr.mxu1 %v2043_v46 }
 0x614   : > { %1843 = vbcast.lane.b32.xlu1 %v1841_v33, 256  ;;  %3024 = vmatpush3.msra.mxu1 %v2027_v47  ;;  %v1491_v33 = vmul.f32 %v1483_v27, %v1445_v9  ;;  %v2943_v47 = vld [vmem:[%s4766_s4 + $0x68] sm:$0xff] }
 0x615   : > { %3025 = vmatprep.subr.mxu1 %v2042_v48  ;;  %v1521_v48 = vrot.slane %v1493_v13, 4 }
 0x616   : > { %3026 = vmatpush3.msra.mxu1 %v2026_v49  ;;  %v1509_v41 = vrot.slane %v1491_v33, 4 }
 0x617   : > { %3027 = vmatprep.subr.mxu1 %v2041_v50 }
 0x618   : > { %1850 = vbcast.lane.b32.xlu1 %v1848_v34, 256  ;;  %3028 = vmatpush3.msra.mxu1 %v2025_v51  ;;  %v1486_v34 = vld [vmem:[%s4766_s4 + $0x28] sm:$0xff]  ;;  %v2944_v51 = vld [vmem:[%s4766_s4 + $0x70] sm:$0xff] }
 0x619   : > { %3029 = vmatprep.subr.mxu1 %v2040_v52  ;;  %v1494_v38 = vmul.f32 %v1486_v34, %v1466_v15  ;;  %v1499_v52 = vrot.slane %v1498_v36, 2  ;;  %v1522_v15 = vadd.f32 %v1521_v48, %v1493_v13 }
 0x61a   : > { %3030 = vmatpush3.msra.mxu1 %v2024_v53  ;;  %v1504_v53 = vadd.f32 %v1503_v37, %v1490_v30 }
 0x61b   : > { %3031 = vmatprep.subr.mxu1 %v2039_v54  ;;  %v1527_v54 = vrot.slane %v1494_v38, 4  ;;  %v1523_v30 = vrot.slane %v1522_v15, 2 }
 0x61c   : > { %1857 = vbcast.lane.b32.xlu1 %v1855_v59, 256  ;;  %3032 = vmatpush3.msra.mxu1 %v2023_v58  ;;  %v1492_v59 = vmul.f32 %v1484_v28, %v1452_v10  ;;  %v1505_v12 = vrot.slane %v1504_v53, 2 }
 0x61d   : > { %3033 = vmatprep.subr.mxu1 %v2038_v61  ;;  %v2945_v61 = vld [vmem:[%s4766_s4 + $0x78] sm:$0xff]  ;;  %v1528_v21 = vadd.f32 %v1527_v54, %v1494_v38 }
 0x61e   : > { %3034 = vmatpush3.msra.mxu1 %v2022_v62  ;;  %v1515_v45 = vrot.slane %v1492_v59, 4 }
 0x61f   : > { %3035 = vmatprep.subr.mxu1 %v2037_v0  ;;  %v1534_v0 = vadd.f32 %v1533_v40, %v1495_v32 }
 0x620   : > { %1864 = vbcast.lane.b32.xlu1 %v1862_v60, 256  ;;  %3036 = vmatpush3.msra.mxu1 %v2021_v2  ;;  %v1480_v60 = vpop.permute.xlu0 %1479  ;;  %v1510_v2 = vadd.f32 %v1509_v41, %v1491_v33  ;;  %v1516_v9 = vadd.f32 %v1515_v45, %v1492_v59  ;;  %v1506_v59 = vadd.f32 %v1505_v12, %v1504_v53 }
 0x621   : > { %3037 = vmatprep.subr.mxu1 %v2036_v3  ;;  %v1496_v44 = vmul.f32 %v1488_v35, %v1480_v60  ;;  %v1535_v24 = vrot.slane %v1534_v0, 2 }
 0x622   : > { %3038 = vmatpush3.msra.mxu1 %v2020_v4  ;;  %v1517_v28 = vrot.slane %v1516_v9, 2 }
 0x623   : > { %3236 = vmatprep.subr.mxu1 %v3703_v5  ;;  %v1539_v8 = vrot.slane %v1496_v44, 4  ;;  %v4384_v35 = vadd.f32 %v1535_v24, %v1534_v0 }
 0x624   : > { %v1518_v37 = vadd.f32 %v1517_v28, %v1516_v9 }
 0x625   : > { %v1540_v27 = vadd.f32 %v1539_v8, %v1496_v44  ;;  %v1507_v44 = vrot.slane %v1506_v59, 1 }
 0x676   : > { %v1816_v16 = vpop.permute.xlu1 %1815 }
 0x677   : > { %v1875_v49 = vmul.f32 %v2938_v56, %v1816_v16 }
 0x67a   : > { %v1823_v17 = vpop.permute.xlu1 %1822 }
 0x67b   : > { %v1876_v42 = vmul.f32 %v2939_v63, %v1823_v17  ;;  %v1883_v17 = vrot.slane %v1875_v49, 4  ;;  %v1529_v63 = vrot.slane %v1528_v21, 2 }
 0x67d   : > { %v1889_v3 = vrot.slane %v1876_v42, 4  ;;  %v1884_v31 = vadd.f32 %v1883_v17, %v1875_v49  ;;  %v1530_v45 = vadd.f32 %v1529_v63, %v1528_v21 }
 0x67e   : > { %v1830_v18 = vpop.permute.xlu1 %1829 }
 0x67f   : > { %v1877_v46 = vmul.f32 %v2940_v14, %v1830_v18  ;;  %v1890_v25 = vadd.f32 %v1889_v3, %v1876_v42  ;;  %v1885_v40 = vrot.slane %v1884_v31, 2  ;;  %v1531_v3 = vrot.slane %v1530_v45, 1 }
 0x681   : > { %v1895_v10 = vrot.slane %v1877_v46, 4  ;;  %v1891_v13 = vrot.slane %v1890_v25, 2 }
 0x682   : > { %v1837_v19 = vpop.permute.xlu1 %1836 }
 0x683   : > { %v1878_v50 = vmul.f32 %v2941_v39, %v1837_v19  ;;  %v1500_v19 = vadd.f32 %v1499_v52, %v1498_v36  ;;  %v1896_v29 = vadd.f32 %v1895_v10, %v1877_v46  ;;  %v1541_v36 = vrot.slane %v1540_v27, 2 }
 0x684   : > { %v1524_v39 = vadd.f32 %v1523_v30, %v1522_v15  ;;  %v1892_v49 = vadd.f32 %v1891_v13, %v1890_v25  ;;  %v1519_v52 = vrot.slane %v1518_v37, 1 }
 0x685   : > { %v1901_v18 = vrot.slane %v1878_v50, 4  ;;  %v1501_v34 = vrot.slane %v1500_v19, 1  ;;  %v1897_v38 = vrot.slane %v1896_v29, 2 }
 0x686   : > { %v1844_v20 = vpop.permute.xlu1 %1843  ;;  %v1893_v9 = vrot.slane %v1892_v49, 1 }
 0x687   : > { %v1879_v58 = vmul.f32 %v2942_v43, %v1844_v20  ;;  %v1511_v20 = vrot.slane %v1510_v2, 2  ;;  %v1902_v32 = vadd.f32 %v1901_v18, %v1878_v50  ;;  %v1502_v43 = vadd.f32 %v1501_v34, %v1500_v19 }
 0x688   : > { %v1898_v53 = vadd.f32 %v1897_v38, %v1896_v29  ;;  %v1894_v25 = vadd.f32 %v1893_v9, %v1892_v49  ;;  %v2206_v9 = vld [vmem:[%s4769_s30 + $0xe8] sm:$0xff] }
 0x689   : > { %v1907_v22 = vrot.slane %v1879_v58, 4  ;;  %v1512_v60 = vadd.f32 %v1511_v20, %v1510_v2  ;;  %v1903_v41 = vrot.slane %v1902_v32, 2  ;;  %v1508_v2 = vadd.f32 %v1507_v44, %v1506_v59 }
 0x68a   : > { %v1851_v23 = vpop.permute.xlu1 %1850  ;;  %v1899_v15 = vrot.slane %v1898_v53, 1 }
 0x68b   : > { %v1880_v4 = vmul.f32 %v2943_v47, %v1851_v23  ;;  %v1537_v47 = vrot.slane %v4384_v35, 1  ;;  %v1513_v48 = vrot.slane %v1512_v60, 1  ;;  %v1554_v21 = vsel %vm1553_vm3, %v1508_v2, %v1502_v43  ;;  %v2192_v2 = vld [vmem:[%s4769_s30 + $0x78] sm:$0xff] }
 0x68c   : > { %v1900_v28 = vadd.f32 %v1899_v15, %v1898_v53  ;;  %v2205_v15 = vld [vmem:[%s4769_s30 + $0xe0] sm:$0xff] }
 0x68d   : > { %v1913_v26 = vrot.slane %v1880_v4, 4  ;;  %v1514_v8 = vadd.f32 %v1513_v48, %v1512_v60  ;;  %v1538_v63 = vadd.f32 %v1537_v47, %v4384_v35  ;;  %v2947_v48 = vld [vmem:[%s4768_s3] ss:$0 sm:$0xff] }
 0x68e   : > { %v1858_v57 = vpop.permute.xlu1 %1857 }
 0x68f   : > { %v1881_v11 = vmul.f32 %v2944_v51, %v1858_v57  ;;  %v1908_v57 = vadd.f32 %v1907_v22, %v1879_v58  ;;  %v1914_v14 = vadd.f32 %v1913_v26, %v1880_v4  ;;  %v1542_v51 = vadd.f32 %v1541_v36, %v1540_v27 }
 0x690   : > { %v1525_v58 = vrot.slane %v1524_v39, 1  ;;  %v1532_v22 = vadd.f32 %v1531_v3, %v1530_v45  ;;  %v1556_v20 = vsel %vm1555_vm4, %v1514_v8, %v1554_v21  ;;  %v2207_v3 = vld [vmem:[%s4769_s30 + $0xf0] sm:$0xff] }
 0x691   : > { %v1919_v23 = vrot.slane %v1881_v11, 4  ;;  %v1909_v46 = vrot.slane %v1908_v57, 2  ;;  %v1915_v50 = vrot.slane %v1914_v14, 2  ;;  %v2191_v8 = vld [vmem:[%s4769_s30 + $0x70] sm:$0xff] }
 0x692   : > { %v1865_v62 = vpop.permute.xlu1 %1864  ;;  %v1526_v18 = vadd.f32 %v1525_v58, %v1524_v39  ;;  %v2203_v21 = vld [vmem:[%s4769_s30 + $0xd0] sm:$0xff] }
 0x693   : > { %v1882_v16 = vmul.f32 %v2945_v61, %v1865_v62  ;;  %v1920_v56 = vadd.f32 %v1919_v23, %v1881_v11  ;;  %v1886_v61 = vadd.f32 %v1885_v40, %v1884_v31  ;;  %v1904_v62 = vadd.f32 %v1903_v41, %v1902_v32 }
 0x694   : > { %v1910_v4 = vadd.f32 %v1909_v46, %v1908_v57  ;;  %v1916_v10 = vadd.f32 %v1915_v50, %v1914_v14  ;;  %v1520_v11 = vadd.f32 %v1519_v52, %v1518_v37  ;;  %v910_v52 = vand.u32 127, %v903_v55  ;;  %v2224_v55 = vld [vmem:[%s4769_s30 + $0x178] sm:$0xff] }
 0x695   : > { %v1925_v33 = vrot.slane %v1882_v16, 4  ;;  %v1921_v54 = vrot.slane %v1920_v56, 2  ;;  %v1905_v19 = vrot.slane %v1904_v62, 1 }
 0x696   : > { %v1911_v24 = vrot.slane %v1910_v4, 1  ;;  %v1917_v26 = vrot.slane %v1916_v10, 1  ;;  %v1558_v27 = vsel %vm1557_vm5, %v1520_v11, %v1556_v20  ;;  %vm911_vm10 = vcmp.lt.s32.totalorder %v910_v52, 30  ;;  %v2190_v11 = vld [vmem:[%s4769_s30 + $0x68] sm:$0xff]  ;;  %v2949_v52 = vld [vmem:[%s845_s14] ss:$0 sm:$0xff] }
 0x697   : > { %v1926_v42 = vadd.f32 %v1925_v33, %v1882_v16  ;;  %v1922_v17 = vadd.f32 %v1921_v54, %v1920_v56  ;;  %v1887_v16 = vrot.slane %v1886_v61, 1  ;;  %v1906_v30 = vadd.f32 %v1905_v19, %v1904_v62  ;;  %v2220_v19 = vld [vmem:[%s4769_s30 + $0x158] sm:$0xff]  ;;  %v2202_v20 = vld [vmem:[%s4769_s30 + $0xc8] sm:$0xff] }
 0x698   : > { %v1560_v32 = vsel %vm1559_vm6, %v1526_v18, %v1558_v27  ;;  %v1543_v33 = vrot.slane %v1542_v51, 1  ;;  %v1912_v34 = vadd.f32 %v1911_v24, %v1910_v4  ;;  %v1918_v60 = vadd.f32 %v1917_v26, %v1916_v10  ;;  %v2223_v4 = vld [vmem:[%s4769_s30 + $0x170] sm:$0xff]  ;;  %v2222_v10 = vld [vmem:[%s4769_s30 + $0x168] sm:$0xff]  ;;  %v2189_v18 = vld [vmem:[%s4769_s30 + $0x60] sm:$0xff] }
 0x699   : > { %v1927_v0 = vrot.slane %v1926_v42, 2  ;;  %v1923_v29 = vrot.slane %v1922_v17, 1  ;;  %v1888_v23 = vadd.f32 %v1887_v16, %v1886_v61  ;;  %v1562_v59 = vsel %vm1561_vm7, %v1532_v22, %v1560_v32  ;;  %v2204_v16 = vld [vmem:[%s4769_s30 + $0xd8] sm:$0xff]  ;;  %v2219_v22 = vld [vmem:[%s4769_s30 + $0x150] sm:$0xff]  ;;  %v2186_v26 = vld [vmem:[%s4769_s30 + $0x48] sm:$0xff] }
 0x69a   : > { %v1564_v36 = vsel %vm1563_vm8, %v1538_v63, %v1562_v59  ;;  %v1544_v56 = vadd.f32 %v1543_v33, %v1542_v51  ;;  %v4409_v58 = vsel %vm911_vm10, 1.0, %v3703_v5  ;;  %v2187_v24 = vld [vmem:[%s4769_s30 + $0x50] sm:$0xff]  ;;  %v2201_v27 = vld [vmem:[%s4769_s30 + $0xc0] sm:$0xff]  ;;  %v2198_v59 = vld [vmem:[%s4769_s30 + $0xa8] sm:$0xff] }
 0x69b   : > { %v1928_v12 = vadd.f32 %v1927_v0, %v1926_v42  ;;  %v1939_v57 = vsel %vm1553_vm3, %v1894_v25, %v1888_v23  ;;  %v1924_v14 = vadd.f32 %v1923_v29, %v1922_v17  ;;  %v2221_v17 = vld [vmem:[%s4769_s30 + $0x160] sm:$0xff]  ;;  %v2218_v25 = vld [vmem:[%s4769_s30 + $0x148] sm:$0xff]  ;;  %v2200_v23 = vld [vmem:[%s4769_s30 + $0xb8] sm:$0xff] }
 0x69c   : > { %v1940_v13 = vsel %vm1555_vm4, %v1900_v28, %v1939_v57  ;;  %v1566_v41 = vsel %vm1565_vm9, %v1544_v56, %v1564_v36  ;;  %v2217_v28 = vld [vmem:[%s4769_s30 + $0x140] sm:$0xff]  ;;  %v2199_v32 = vld [vmem:[%s4769_s30 + $0xb0] sm:$0xff]  ;;  %v2214_v63 = vld [vmem:[%s4769_s30 + $0x128] sm:$0xff] }
 0x69d   : > { %v1929_v31 = vrot.slane %v1928_v12, 1  ;;  %v1941_v38 = vsel %vm1557_vm5, %v1906_v30, %v1940_v13  ;;  %v1638_v45 = vadd.f32 %v4307_v6, %v1566_v41  ;;  %v2185_v29 = vld [vmem:[%s4769_s30 + $0x40] sm:$0xff]  ;;  %v2216_v30 = vld [vmem:[%s4769_s30 + $0x138] sm:$0xff]  ;;  %v2215_v33 = vld [vmem:[%s4769_s30 + $0x130] sm:$0xff] }
 0x69e   : > { %v1942_v39 = vsel %vm1559_vm6, %v1912_v34, %v1941_v38  ;;  %v2183_v34 = vld [vmem:[%s4769_s30 + $0x30] sm:$0xff]  ;;  %v2182_v57 = vld [vmem:[%s4769_s30 + $0x28] sm:$0xff]  ;;  %v2213_v13 = vld [vmem:[%s4769_s30 + $0x120] sm:$0xff] }
 0x69f   : > { %v1930_v37 = vadd.f32 %v1929_v31, %v1928_v12  ;;  %v1943_v40 = vsel %vm1561_vm7, %v1918_v60, %v1942_v39  ;;  %v2188_v12 = vld [vmem:[%s4769_s30 + $0x58] sm:$0xff]  ;;  %v2197_v60 = vld [vmem:[%s4769_s30 + $0xa0] sm:$0xff]  ;;  %v2195_v56 = vld [vmem:[%s4769_s30 + $0x90] sm:$0xff] }
 0x6a0   : > { %v1944_v42 = vsel %vm1563_vm8, %v1924_v14, %v1943_v40  ;;  %v2184_v31 = vld [vmem:[%s4769_s30 + $0x38] sm:$0xff]  ;;  %v2181_v14 = vld [vmem:[%s4769_s30 + $0x20] sm:$0xff]  ;;  %v2211_v39 = vld [vmem:[%s4769_s30 + $0x110] sm:$0xff] }
 0x6a1   : > { %v1945_v35 = vsel %vm1565_vm9, %v1930_v37, %v1944_v42  ;;  %v2196_v36 = vld [vmem:[%s4769_s30 + $0x98] sm:$0xff]  ;;  %v2179_v40 = vld [vmem:[%s4769_s30 + $0x10] sm:$0xff]  ;;  %v2194_v41 = vld [vmem:[%s4769_s30 + $0x88] sm:$0xff] }
 0x6a2   : > { %v2212_v37 = vld [vmem:[%s4769_s30 + $0x118] sm:$0xff]  ;;  %v2210_v42 = vld [vmem:[%s4769_s30 + $0x108] sm:$0xff] }
 0x6a3   : > { %v2180_v38 = vld [vmem:[%s4769_s30 + $0x18] sm:$0xff] }
 0x6c2   : > { %v2016_v43 = vpop.f32.mrf.mxu1 }
 0x6c3   : > { %v2017_v44 = vadd.f32 %v2016_v43, %v1945_v35  ;;  %v2178_v35 = vld [vmem:[%s4769_s30 + $0x8] sm:$0xff]  ;;  %v2193_v43 = vld [vmem:[%s4769_s30 + $0x80] sm:$0xff] }
 0x6c4   : > { %v3235_v46 = vpop.f32.mrf.mxu1 }
 0x6c5   : > { %2123 = vmatprep.mubr.f32.mxu1 %v2017_v44  ;;  %v2209_v44 = vld [vmem:[%s4769_s30 + $0x100] sm:$0xff]  ;;  %v2420_v46 = vld [vmem:[%s4770_s5 + $0xf8] sm:$0xff] }
 0x6c6   : > { %2124 = vmatmul.mubr.f32.vlgmr.msra.gmra.mxu1 %v1638_v45  ;;  %v2177_v45 = vld [vmem:[%s4769_s30] sm:$0xff] }
 0x6c7   : > { %3268 = vmatprep.mubr.msk.f32.mxu1 %vm3704_vm0, %v3703_v5  ;;  %3237 = vmatpush3.msra.mxu1 %v2224_v55 }
 0x6c8   : > { %3238 = vmatprep.subr.mxu1 %v3703_v5 }
 0x6c9   : > { %3239 = vmatpush3.msra.mxu1 %v2223_v4 }
 0x6ca   : > { %3240 = vmatprep.subr.mxu1 %v3703_v5 }
 0x6cb   : > { %3241 = vmatpush3.msra.mxu1 %v2222_v10 }
 0x6cc   : > { %3242 = vmatprep.subr.mxu1 %v3703_v5 }
 0x6cd   : > { %3243 = vmatpush3.msra.mxu1 %v2221_v17  ;;  %v2419_v17 = vld [vmem:[%s4770_s5 + $0xf0] sm:$0xff] }
 0x6ce   : > { %3244 = vmatprep.subr.mxu1 %v3703_v5 }
 0x6cf   : > { %3245 = vmatpush3.msra.mxu1 %v2220_v19  ;;  %v2418_v19 = vld [vmem:[%s4770_s5 + $0xe8] sm:$0xff] }
 0x6d0   : > { %3246 = vmatprep.subr.mxu1 %v3703_v5 }
 0x6d1   : > { %3247 = vmatpush3.msra.mxu1 %v2219_v22  ;;  %v2417_v22 = vld [vmem:[%s4770_s5 + $0xe0] sm:$0xff] }
 0x6d2   : > { %3248 = vmatprep.subr.mxu1 %v3703_v5 }
 0x6d3   : > { %3249 = vmatpush3.msra.mxu1 %v2218_v25  ;;  %v2416_v25 = vld [vmem:[%s4770_s5 + $0xd8] sm:$0xff] }
 0x6d4   : > { %3250 = vmatprep.subr.mxu1 %v3703_v5 }
 0x6d5   : > { %3251 = vmatpush3.msra.mxu1 %v2217_v28  ;;  %v2415_v28 = vld [vmem:[%s4770_s5 + $0xd0] sm:$0xff] }
 0x6d6   : > { %3252 = vmatprep.subr.mxu1 %v3703_v5 }
 0x6d7   : > { %3253 = vmatpush3.msra.mxu1 %v2216_v30  ;;  %v2414_v30 = vld [vmem:[%s4770_s5 + $0xc8] sm:$0xff] }
 0x6d8   : > { %3254 = vmatprep.subr.mxu1 %v3703_v5 }
 0x6d9   : > { %3255 = vmatpush3.msra.mxu1 %v2215_v33  ;;  %v2413_v33 = vld [vmem:[%s4770_s5 + $0xc0] sm:$0xff] }
 0x6da   : > { %3256 = vmatprep.subr.mxu1 %v3703_v5 }
 0x6db   : > { %3257 = vmatpush3.msra.mxu1 %v2214_v63  ;;  %v2412_v63 = vld [vmem:[%s4770_s5 + $0xb8] sm:$0xff] }
 0x6dc   : > { %3258 = vmatprep.subr.mxu1 %v3703_v5 }
 0x6dd   : > { %3259 = vmatpush3.msra.mxu1 %v2213_v13  ;;  %v2411_v13 = vld [vmem:[%s4770_s5 + $0xb0] sm:$0xff] }
 0x6de   : > { %3260 = vmatprep.subr.mxu1 %v3703_v5 }
 0x6df   : > { %3261 = vmatpush3.msra.mxu1 %v2212_v37  ;;  %v2410_v37 = vld [vmem:[%s4770_s5 + $0xa8] sm:$0xff] }
 0x6e0   : > { %3262 = vmatprep.subr.mxu1 %v3703_v5 }
 0x6e1   : > { %3263 = vmatpush3.msra.mxu1 %v2211_v39  ;;  %v2409_v39 = vld [vmem:[%s4770_s5 + $0xa0] sm:$0xff] }
 0x6e2   : > { %3264 = vmatprep.subr.mxu1 %v3703_v5 }
 0x6e3   : > { %3265 = vmatpush3.msra.mxu1 %v2210_v42  ;;  %v2408_v42 = vld [vmem:[%s4770_s5 + $0x98] sm:$0xff] }
 0x6e4   : > { %3266 = vmatprep.subr.mxu1 %v3703_v5 }
 0x6e5   : > { %3267 = vmatpush3.msra.mxu1 %v2209_v44  ;;  %v2407_v44 = vld [vmem:[%s4770_s5 + $0x90] sm:$0xff] }
 0x6e6   : > { %3271 = vmatprep.subr.mxu1 %v3703_v5 }
 0x786   : > { %v3039_v47 = vpop.f32.mrf.mxu1 }
 0x788   : > { %v3040_v49 = vpop.f32.mrf.mxu1 }
 0x789   : > { %v3041_v50 = vadd.f32 %v3040_v49, %v3039_v47 }
 0x78b   : > { %v2126_v51 = vadd.f32 %v3041_v50, %v2947_v48 }
 0x78d   : > { %v2129_v6 = vadd.f32 %v2126_v51, %v4134_v7  ;;  %v2208_v7 = vld [vmem:[%s4769_s30 + $0xf8] sm:$0xff]  ;;  %v2948_v51 = vld [vmem:[%s842_s18] ss:$0 sm:$0xff] }
 0x78e   : > { %3042 = vmatprep.subr.mxu0 %v2208_v7 }
 0x78f   : > { %2132 = vadd.xlane.f32.xlu1 %v2129_v6  ;;  %3043 = vmatpush3.msra.mxu0 %v2192_v2 }
 0x790   : > { %3044 = vmatprep.subr.mxu0 %v2207_v3 }
 0x791   : > { %3045 = vmatpush3.msra.mxu0 %v2191_v8 }
 0x792   : > { %3046 = vmatprep.subr.mxu0 %v2206_v9  ;;  %v2436_v9 = vld [vmem:[%s4770_s5 + $0x178] sm:$0xff] }
 0x793   : > { %3047 = vmatpush3.msra.mxu0 %v2190_v11 }
 0x794   : > { %3048 = vmatprep.subr.mxu0 %v2205_v15  ;;  %v2404_v15 = vld [vmem:[%s4770_s5 + $0x78] sm:$0xff] }
 0x795   : > { %3049 = vmatpush3.msra.mxu0 %v2189_v18  ;;  %v2435_v18 = vld [vmem:[%s4770_s5 + $0x170] sm:$0xff] }
 0x796   : > { %3050 = vmatprep.subr.mxu0 %v2204_v16  ;;  %v2403_v16 = vld [vmem:[%s4770_s5 + $0x70] sm:$0xff] }
 0x797   : > { %3051 = vmatpush3.msra.mxu0 %v2188_v12  ;;  %v2434_v12 = vld [vmem:[%s4770_s5 + $0x168] sm:$0xff] }
 0x798   : > { %3052 = vmatprep.subr.mxu0 %v2203_v21  ;;  %v2402_v21 = vld [vmem:[%s4770_s5 + $0x68] sm:$0xff] }
 0x799   : > { %3053 = vmatpush3.msra.mxu0 %v2187_v24  ;;  %v2433_v24 = vld [vmem:[%s4770_s5 + $0x160] sm:$0xff] }
 0x79a   : > { %3054 = vmatprep.subr.mxu0 %v2202_v20  ;;  %v2401_v20 = vld [vmem:[%s4770_s5 + $0x60] sm:$0xff] }
 0x79b   : > { %3055 = vmatpush3.msra.mxu0 %v2186_v26  ;;  %v2432_v26 = vld [vmem:[%s4770_s5 + $0x158] sm:$0xff] }
 0x79c   : > { %3056 = vmatprep.subr.mxu0 %v2201_v27  ;;  %v2400_v27 = vld [vmem:[%s4770_s5 + $0x58] sm:$0xff] }
 0x79d   : > { %3057 = vmatpush3.msra.mxu0 %v2185_v29  ;;  %v2431_v29 = vld [vmem:[%s4770_s5 + $0x150] sm:$0xff] }
 0x79e   : > { %3058 = vmatprep.subr.mxu0 %v2200_v23  ;;  %v2399_v23 = vld [vmem:[%s4770_s5 + $0x50] sm:$0xff] }
 0x79f   : > { %3059 = vmatpush3.msra.mxu0 %v2184_v31  ;;  %v2430_v31 = vld [vmem:[%s4770_s5 + $0x148] sm:$0xff] }
 0x7a0   : > { %3060 = vmatprep.subr.mxu0 %v2199_v32  ;;  %v2398_v32 = vld [vmem:[%s4770_s5 + $0x48] sm:$0xff] }
 0x7a1   : > { %3061 = vmatpush3.msra.mxu0 %v2183_v34  ;;  %v2429_v34 = vld [vmem:[%s4770_s5 + $0x140] sm:$0xff] }
 0x7a2   : > { %3062 = vmatprep.subr.mxu0 %v2198_v59  ;;  %v2397_v59 = vld [vmem:[%s4770_s5 + $0x40] sm:$0xff] }
 0x7a3   : > { %3063 = vmatpush3.msra.mxu0 %v2182_v57  ;;  %v2428_v57 = vld [vmem:[%s4770_s5 + $0x138] sm:$0xff] }
 0x7a4   : > { %3064 = vmatprep.subr.mxu0 %v2197_v60  ;;  %v2396_v60 = vld [vmem:[%s4770_s5 + $0x38] sm:$0xff] }
 0x7a5   : > { %3065 = vmatpush3.msra.mxu0 %v2181_v14  ;;  %v2427_v14 = vld [vmem:[%s4770_s5 + $0x130] sm:$0xff] }
 0x7a6   : > { %3066 = vmatprep.subr.mxu0 %v2196_v36  ;;  %v2395_v36 = vld [vmem:[%s4770_s5 + $0x30] sm:$0xff] }
 0x7a7   : > { %3067 = vmatpush3.msra.mxu0 %v2180_v38  ;;  %v2426_v38 = vld [vmem:[%s4770_s5 + $0x128] sm:$0xff] }
 0x7a8   : > { %3068 = vmatprep.subr.mxu0 %v2195_v56  ;;  %v2394_v56 = vld [vmem:[%s4770_s5 + $0x28] sm:$0xff] }
 0x7a9   : > { %3069 = vmatpush3.msra.mxu0 %v2179_v40  ;;  %v2425_v40 = vld [vmem:[%s4770_s5 + $0x120] sm:$0xff] }
 0x7aa   : > { %3070 = vmatprep.subr.mxu0 %v2194_v41  ;;  %v2393_v41 = vld [vmem:[%s4770_s5 + $0x20] sm:$0xff] }
 0x7ab   : > { %3071 = vmatpush3.msra.mxu0 %v2178_v35  ;;  %v2424_v35 = vld [vmem:[%s4770_s5 + $0x118] sm:$0xff] }
 0x7ac   : > { %3072 = vmatprep.subr.mxu0 %v2193_v43  ;;  %v2392_v43 = vld [vmem:[%s4770_s5 + $0x18] sm:$0xff] }
 0x7ad   : > { %3073 = vmatpush3.msra.mxu0 %v2177_v45  ;;  %v2423_v45 = vld [vmem:[%s4770_s5 + $0x110] sm:$0xff] }
 0x7ae   : > { %3094 = vmatprep.subr.mxu0 %v2420_v46  ;;  %v2391_v46 = vld [vmem:[%s4770_s5 + $0x10] sm:$0xff] }
 0x818   : > { %v2133_v53 = vpop.xlane.xlu1 %2132 }
 0x819   : > { %v2134_v54 = vmul.f32 0.033333335, %v2133_v53 }
 0x81b   : > { %v2135_v61 = vsub.f32 %v2129_v6, %v2134_v54 }
 0x81d   : > { %v4412_v62 = vmul.f32 %v4409_v58, %v2135_v61 }
 0x81f   : > { %v2137_v0 = vmul.f32 %v4412_v62, %v4412_v62 }
 0x821   : > { %2138 = vadd.xlane.f32.xlu0 %v2137_v0 }
 0x8aa   : > { %v2139_v47 = vpop.xlane.xlu0 %2138 }
 0x8ab   : > { %v2140_v48 = vmul.f32 0.033333335, %v2139_v47  ;;  %v2406_v47 = vld [vmem:[%s4770_s5 + $0x88] sm:$0xff] }
 0x8ad   : > { %v2141_v49 = vadd.f32 1e-05, %v2140_v48  ;;  %v2422_v48 = vld [vmem:[%s4770_s5 + $0x108] sm:$0xff] }
 0x8af   : > { %3448 = vrsqrt.f32 %v2141_v49  ;;  %v2390_v49 = vld [vmem:[%s4770_s5 + $0x8] sm:$0xff] }
 0x8bc   : > { %v3449_v50 = vpop.eup %3448 }
 0x8bd   : > { %v2143_v6 = vmul.f32 %v3449_v50, %v4412_v62  ;;  %v2405_v50 = vld [vmem:[%s4770_s5 + $0x80] sm:$0xff] }
 0x8bf   : > { %v2150_v53 = vmul.f32 %v2948_v51, %v2143_v6  ;;  %v2421_v51 = vld [vmem:[%s4770_s5 + $0x100] sm:$0xff] }
 0x8c0   : > { %v2389_v6 = vld [vmem:[%s4770_s5] sm:$0xff]  ;;  %s4782_s5 = sld [smem:[#allocation50_spill]] }
 0x8c1   : > { %v4492_v54 = vadd.f32 %v2949_v52, %v2150_v53 }
 0x8c3   : > { %v2158_v61 = vmul.f32 %v4492_v54, %v4131_v1 }
 0x8c5   : > { %v2160_v0 = vrot.slane %v2158_v61, 7 }
 0x8c6   : > { %s4607_s24 = scalar_lea.hbm %s4782_s5, %s2959_s28 }
 0x8c7   : > { %v2163_v7 = vsel %vm2162_vm11, 0.0, %v2160_v0  ;;  %v2164_v62 = vsel %vm2162_vm11, %v2160_v0, 0.0 }
 0x8c8   : > { %v2168_v55 = vrot.slane %v2163_v7, 1  ;;  %v2169_v2 = vrot.slane %v2164_v62, 1  ;;  %v2173_v3 = vrot.slane %v2163_v7, 2  ;;  %v2174_v4 = vrot.slane %v2164_v62, 2 }
 0x8ca   : > { %v2170_v10 = vsel %vm2167_vm12, %v2168_v55, %v2169_v2  ;;  %v2175_v11 = vsel %vm2172_vm13, %v2173_v3, %v2174_v4 }
 0x8cb   : > { %2296 = vmatprep.mubr.f32.mxu0 %v2170_v10  ;;  %3269 = vmatmul.mubr.f32.vlgmr.msra.gmra.mxu1 %v2175_v11 }
 0x8cc   : > { %2952 = vmatmul.mubr.msk.f32.vlgmr.msra.gmra.mxu0 %vm4499_vm14, %v2160_v0  ;;  %3272 = vmatpush3.msra.mxu1 %v2436_v9  ;;  %v2950_v0 = vld [vmem:[%s848_s12] ss:$0 sm:$0xff] }
 0x8cd   : > { %3095 = vmatpush3.msra.mxu0 %v2404_v15  ;;  %3273 = vmatprep.subr.mxu1 %v3703_v5 }
 0x8ce   : > { %3096 = vmatprep.subr.mxu0 %v2419_v17  ;;  %3274 = vmatpush3.msra.mxu1 %v2435_v18 }
 0x8cf   : > { %3097 = vmatpush3.msra.mxu0 %v2403_v16  ;;  %3275 = vmatprep.subr.mxu1 %v3703_v5 }
 0x8d0   : > { %3098 = vmatprep.subr.mxu0 %v2418_v19  ;;  %3276 = vmatpush3.msra.mxu1 %v2434_v12 }
 0x8d1   : > { %3099 = vmatpush3.msra.mxu0 %v2402_v21  ;;  %3277 = vmatprep.subr.mxu1 %v3703_v5 }
 0x8d2   : > { %3100 = vmatprep.subr.mxu0 %v2417_v22  ;;  %3278 = vmatpush3.msra.mxu1 %v2433_v24  ;;  %v2953_v24 = vld [vmem:[%s851_s2] ss:$0 sm:$0xff] }
 0x8d3   : > { %3101 = vmatpush3.msra.mxu0 %v2401_v20  ;;  %3279 = vmatprep.subr.mxu1 %v3703_v5 }
 0x8d4   : > { %3102 = vmatprep.subr.mxu0 %v2416_v25  ;;  %3280 = vmatpush3.msra.mxu1 %v2432_v26 }
 0x8d5   : > { %3103 = vmatpush3.msra.mxu0 %v2400_v27  ;;  %3281 = vmatprep.subr.mxu1 %v3703_v5 }
 0x8d6   : > { %3104 = vmatprep.subr.mxu0 %v2415_v28  ;;  %3282 = vmatpush3.msra.mxu1 %v2431_v29 }
 0x8d7   : > { %3283 = vmatprep.subr.mxu1 %v3703_v5  ;;  %3303 = vmatprep.mubr.msk.f32.mxu1 %vm3704_vm0, %v3703_v5 }
 0x8d8   : > { %3105 = vmatpush3.msra.mxu0 %v2399_v23  ;;  %3284 = vmatpush3.msra.mxu1 %v2430_v31 }
 0x8d9   : > { %3106 = vmatprep.subr.mxu0 %v2414_v30  ;;  %3285 = vmatprep.subr.mxu1 %v3703_v5 }
 0x8da   : > { %3107 = vmatpush3.msra.mxu0 %v2398_v32  ;;  %3286 = vmatpush3.msra.mxu1 %v2429_v34 }
 0x8db   : > { %3108 = vmatprep.subr.mxu0 %v2413_v33  ;;  %3287 = vmatprep.subr.mxu1 %v3703_v5 }
 0x8dc   : > { %3109 = vmatpush3.msra.mxu0 %v2397_v59  ;;  %3288 = vmatpush3.msra.mxu1 %v2428_v57 }
 0x8dd   : > { %3110 = vmatprep.subr.mxu0 %v2412_v63  ;;  %3289 = vmatprep.subr.mxu1 %v3703_v5 }
 0x8de   : > { %3111 = vmatpush3.msra.mxu0 %v2396_v60  ;;  %3290 = vmatpush3.msra.mxu1 %v2427_v14 }
 0x8df   : > { %3112 = vmatprep.subr.mxu0 %v2411_v13  ;;  %3291 = vmatprep.subr.mxu1 %v3703_v5 }
 0x8e0   : > { %3113 = vmatpush3.msra.mxu0 %v2395_v36  ;;  %3292 = vmatpush3.msra.mxu1 %v2426_v38 }
 0x8e1   : > { %3114 = vmatprep.subr.mxu0 %v2410_v37  ;;  %3293 = vmatprep.subr.mxu1 %v3703_v5 }
 0x8e2   : > { %3115 = vmatpush3.msra.mxu0 %v2394_v56  ;;  %3294 = vmatpush3.msra.mxu1 %v2425_v40 }
 0x8e3   : > { %3116 = vmatprep.subr.mxu0 %v2409_v39  ;;  %3295 = vmatprep.subr.mxu1 %v3703_v5 }
 0x8e4   : > { %3117 = vmatpush3.msra.mxu0 %v2393_v41  ;;  %3296 = vmatpush3.msra.mxu1 %v2424_v35 }
 0x8e5   : > { %3118 = vmatprep.subr.mxu0 %v2408_v42  ;;  %3297 = vmatprep.subr.mxu1 %v3703_v5 }
 0x8e6   : > { %3119 = vmatpush3.msra.mxu0 %v2392_v43  ;;  %3298 = vmatpush3.msra.mxu1 %v2423_v45 }
 0x8e7   : > { %3120 = vmatprep.subr.mxu0 %v2407_v44  ;;  %3299 = vmatprep.subr.mxu1 %v3703_v5 }
 0x8e8   : > { %3121 = vmatpush3.msra.mxu0 %v2391_v46  ;;  %3300 = vmatpush3.msra.mxu1 %v2422_v48 }
 0x8e9   : > { %3122 = vmatprep.subr.mxu0 %v2406_v47  ;;  %3301 = vmatprep.subr.mxu1 %v3703_v5 }
 0x8ea   : > { %3123 = vmatpush3.msra.mxu0 %v2390_v49  ;;  %3302 = vmatpush3.msra.mxu1 %v2421_v51 }
 0x8eb   : > { %3124 = vmatprep.subr.mxu0 %v2405_v50 }
 0x8ec   : > { %3125 = vmatpush3.msra.mxu0 %v2389_v6 }
 0x98b   : > { %v2368_v52 = vpop.f32.mrf.mxu1 }
 0x98c   : > { %v3074_v53 = vpop.f32.mrf.mxu0 }
 0x98d   : > { %v3270_v61 = vpop.f32.mrf.mxu1 }
 0x98e   : > { %v3075_v7 = vpop.f32.mrf.mxu0 }
 0x98f   : > { %v3076_v62 = vadd.f32 %v3075_v7, %v3074_v53 }
 0x991   : > { %v2299_v55 = vadd.f32 %v3076_v62, %v2950_v0 }
 0x993   : > { %v2369_v2 = vadd.f32 %v2368_v52, %v2299_v55 }
 0x995   : > { %v2372_v3 = vmax.f32 %v2369_v2, 0.0 }
 0x997   : > { %v2373_v4 = vmul.f32 %v2372_v3, %v4131_v1 }
 0x999   : > { %v2375_v5 = vrot.slane %v2373_v4, 7 }
 0x99b   : > { %v2377_v9 = vsel %vm2162_vm11, 0.0, %v2375_v5  ;;  %v2378_v10 = vsel %vm2162_vm11, %v2375_v5, 0.0 }
 0x99c   : > { %v2381_v11 = vrot.slane %v2377_v9, 1  ;;  %v2382_v15 = vrot.slane %v2378_v10, 1  ;;  %v2385_v17 = vrot.slane %v2377_v9, 2  ;;  %v2386_v18 = vrot.slane %v2378_v10, 2 }
 0x99e   : > { %v2383_v16 = vsel %vm2167_vm12, %v2381_v11, %v2382_v15  ;;  %v2387_v19 = vsel %vm2172_vm13, %v2385_v17, %v2386_v18 }
 0x99f   : > { %2508 = vmatprep.mubr.f32.mxu0 %v2383_v16  ;;  %3304 = vmatmul.mubr.f32.vlgmr.msra.gmra.mxu1 %v2387_v19 }
 0x9a0   : > { %2955 = vmatmul.mubr.msk.f32.vlgmr.msra.gmra.mxu0 %vm4499_vm14, %v2375_v5 }
 0xa5f   : > { %v2580_v12 = vpop.f32.mrf.mxu1 }
 0xa60   : > { %v3126_v21 = vpop.f32.mrf.mxu0 }
 0xa61   : > { %v3305_v22 = vpop.f32.mrf.mxu1 }
 0xa62   : > { %v3127_v20 = vpop.f32.mrf.mxu0 }
 0xa63   : > { %v3128_v25 = vadd.f32 %v3127_v20, %v3126_v21 }
 0xa65   : > { %v2511_v26 = vadd.f32 %v3128_v25, %v2953_v24 }
 0xa67   : > { %v2581_v27 = vadd.f32 %v2580_v12, %v2511_v26 }
 0xa69   : > { %v2584_v28 = vmul.f32 %v2581_v27, %v4131_v1 }
 0xa6b   : > { %v2585_v29 = vadd.f32 %v2584_v28, %v4492_v54  ;;  %v2956_v54 = vld [vmem:[%s854_s21] ss:$0 sm:$0xff]  ;;  %s4783_s21 = sand.u32 1, %s4778_s16  }
 0xa6c   : > { %s2617_s6 = scalar_lea.sflag [#allocation5], %s4783_s21 }
 0xa6d   : > { %2588 = vadd.xlane.f32.xlu0 %v2585_v29 }
 0xaf6   : > { %v2589_v8 = vpop.xlane.xlu0 %2588 }
 0xaf7   : > { %v2590_v23 = vmul.f32 0.033333335, %v2589_v8 }
 0xaf9   : > { %v2591_v30 = vsub.f32 %v2585_v29, %v2590_v23 }
 0xafb   : > { %v2592_v31 = vmul.f32 %v4409_v58, %v2591_v30  ;;  %v2957_v58 = vld [vmem:[%s857_s22] ss:$0 sm:$0xff]  ;;  %s3568_s22 = sshll.u32 %s3705_s0, 4  ;;  %s3569_s22 = int_to_ptr.vmem [resolvable:$false] %s3568_s22 }
 0xafc   : > { %s3570_s19 = scalar_lea.vmem %s3569_s22, 256  ;;  %p3571_p1 = scmp.lt.s32.totalorder %s2631_s15, %s3569_s22 }
 0xafd   : > { %v2593_v32 = vmul.f32 %v2592_v31, %v2592_v31  ;;  %p3572_p7 = scmp.lt.s32.totalorder %s3570_s19, %s3564_s13 }
 0xaff   : > { %2594 = vadd.xlane.f32.xlu1 %v2593_v32  ;;  %p3573_p9 = por %p3572_p7, %p3571_p1 }
 0xb01   : > { %p3574_p5 = pnand %p3573_p9, %p3567_p0 }
 0xb88   : > { %v2595_v33 = vpop.xlane.xlu1 %2594 }
 0xb89   : > { %v2596_v34 = vmul.f32 0.033333335, %v2595_v33 }
 0xb8b   : > { %v2597_v59 = vadd.f32 1e-05, %v2596_v34 }
 0xb8d   : > { %3450 = vrsqrt.f32 %v2597_v59 }
 0xb9a   : > { %v3451_v1 = vpop.eup %3450 }
 0xb9b   : > { %v2599_v63 = vmul.f32 %v3451_v1, %v2592_v31 }
 0xb9d   : > { %v2606_v57 = vmul.f32 %v2956_v54, %v2599_v63 }
 0xb9f   : > { %v2613_v60 = vadd.f32 %v2957_v58, %v2606_v57 }
 0xba1   : > { %2614 = vst [vmem:[#allocation2] sm:$0xff] %v2613_v60  ;;  %2615 = vst [vmem:[%s814_s7] sm:$0xff] %v2613_v60 }
 0xba2   : > { %3577 = shalt.err (!%p3574_p5)
}
 0xba3   : > { %s3578_s8 = scalar_lea.hbm %s4607_s24, 128  ;;  %s3582_s17 = scalar_lea.hbm %s4782_s5, 256 }
 0xba4   : > { %p3579_p10 = scmp.ne.s32.totalorder %s4607_s24, %s3578_s8  ;;  %p3583_p6 = scmp.lt.s32.totalorder %s4607_s24, %s4782_s5 }
 0xba5   : > { %p3584_p8 = scmp.lt.s32.totalorder %s3582_s17, %s3578_s8 }
 0xba6   : > { %p3580_p11 = pnand %p3579_p10, %p3883_p12 }
 0xba7   : > { %p3585_p3 = por %p3584_p8, %p3583_p6 }
 0xba8   : > { %p3581_p4 = pneg %p3580_p11 }
 0xbaa   : > { %p3586_p13 = pnand %p3585_p3, %p3581_p4 }
 0xbac   : > { %3589 = shalt.err (!%p3586_p13)
}
 0xbad   : > { %3323 = dma.vmem_to_hbm [thread:$0]  (%p3883_p12), %s2631_s15, 128, %s4607_s24, %s2617_s6  }
 0xbae PF: > { %s4784_s10 = sld [smem:[#allocation24_spill]] }
 0xbaf   : > { %s4785_s12 = sld [smem:[#allocation16_spill]] }
 0xbb4   : > { %p3343_p0 = scmp.ge.s32.totalorder %s4784_s10, 2 }
 0xbb5   : > { %s2642_s29 = sand.u32 1, %s4785_s12  }
 0xbb6   : > { %p3339_p1 = pnand %p3343_p0, %p3893_p2  ;;  %s2643_s25 = scalar_lea.sflag [#allocation5], %s2642_s29 }
 0xbb8   : > { %p3340_p7 = pneg %p3339_p1 }
 0xbba   : > { %3647 = dma.done.wait (%p3340_p7), %s2643_s25, 128  }
 0xbbb   : > { %3649 = vsyncadd (%p3340_p7), %s2643_s25, 4294967168  ;;  %s38_s0 = sadd.s32 1, %s4784_s10   ;;  %s4787_s21 = sld [smem:[#allocation17_spill]] }
 0xbbc   : > { %p35_p9 = scmp.ge.s32.totalorder %s38_s0, 6   ;;  %s4788_s22 = sld [smem:[#allocation18_spill]] }
 0xbbd   : > { %s4789_s23 = sld [smem:[#allocation28_spill]] }
 0xbbe   : > { %s4790_s24 = sld [smem:[#allocation19_spill]] }
 0xbbf   : > { %s4791_s25 = sld [smem:[#allocation20_spill]] }
 0xbc0   : > { %s4792_s26 = sld [smem:[#allocation27_spill]]  ;;  %37 = sbr.rel (!%p35_p9) target bundleno = 31 (0x1f), region = 208 }
 0xbc1   : > { %s4793_s27 = sld [smem:[#allocation22_spill]] }
 0xbc2   : > { %s4794_s28 = sld [smem:[#allocation23_spill]] }
 0xbc3   : > { %s4795_s29 = sld [smem:[#allocation25_spill]] }
 0xbc4   : > { %s4796_s30 = sld [smem:[#allocation26_spill]] }
 0xbc5   :  { %2648 = vsyncpa [#allocation4], 1 }
 0xbc6   :  { %2650 = vsyncpa [#allocation4 + $0x1], 1 }
 0xbc7   :  { %2651 = vsyncpa [#allocation7], 1 }
 0xbc8   :  { %2653 = vsyncpa [#allocation7 + $0x1], 1 }
 0xbc9   :  { %2654 = vsyncpa [#allocation10], 1 }
 0xbca   :  { %2656 = vsyncpa [#allocation10 + $0x1], 1 }
 0xbcb   :  { %2657 = vsyncpa [#allocation5], 1 }
 0xbcc   :  { %2659 = vsyncpa [#allocation5 + $0x1], 1 }

</bundles_post_ra>
